<compile_context>
chip_gen: v6e
topology: v6e:2x2x1
jax: 0.10.0
libtpu: 0.0.40
codegen_flags: <defaults>
</compile_context>

<pallas_src>
import jax
import jax.numpy as jnp
from jax.experimental import pallas as pl
from jax.experimental.pallas import tpu as pltpu

N_POINTS = 128                      # points per cloud (small synthetic size)
H1 = 64                             # first per-point MLP width
H2 = 128                            # second per-point MLP width (= global feature width)
PER_POINT_OUT = 3 + 18 + 6 + 6      # recon delta | 6 face normals | 6 face dists | 6 face confs
GLOBAL_OUT = 3 + 3 + 1 + 1 + 3 + 3  # p_green_R | p_red_R | f_green_R | f_red_R | Pred_T | Pred_s
PP_SLAB = 128                       # lane-dense per-point output slab width
GL_SLAB = 128                       # lane-dense global output slab width

# lane offsets inside the 128-lane slabs
NRM_OFF = 3                         # 3..20  : face normals (6 groups of 3)
DIS_OFF = 21                        # 21..26 : face distances
SIG_OFF = 27                        # 27..32 : face confidences (sigmoid)
GL_OFF = 64                         # global heads live at lanes 64..77 of the fused projection
ROT_OFF = GL_OFF                    # 64..69 : p_green_R | p_red_R (L2-normalized per 3 lanes)
CONF_OFF = GL_OFF + 6               # 70..71 : f_green_R | f_red_R (sigmoid)
TR_OFF = GL_OFF + 8                 # 72..74 : Pred_T (+ centroid)
SZ_OFF = GL_OFF + 11                # 75..77 : Pred_s

MAX_B_BLK = 32                      # batch elements per grid step


def _posenet_kernel(pc_ref, w1_ref, b1_ref, w2_ref, b2_ref,
                    wpl_ref, bp_ref, wgl_ref, bgl_ref, grp_ref,
                    pp_ref, gl_ref):
    Bb, N, _ = pc_ref.shape
    M = Bb * N
    f32 = jnp.float32

    pc = pc_ref[...]                                        # (Bb, N, 3)

    # zero-mean points (matches batch['zero_mean_pts_1'] = PC - PC.mean(dim=1))
    center = jnp.mean(pc, axis=1, keepdims=True)            # (Bb, 1, 3)
    x = (pc - center).reshape(M, 3)                         # (M, 3)

    # --- per-point layer 1: K=3 contraction on the VPU (outer product) ---
    # TODO(synk): if the lane-broadcast path ever saturates, switch to a small MXU matmul.
    w1 = w1_ref[...]                                        # (3, H1)
    h1 = (x[:, 0:1] * w1[0:1, :]
          + x[:, 1:2] * w1[1:2, :]
          + x[:, 2:3] * w1[2:3, :]
          + b1_ref[...])
    h1 = jnp.maximum(h1, 0.0)                               # (M, H1)

    # --- per-point layer 2: MXU matmul ---
    h2 = jnp.dot(h1, w2_ref[...], preferred_element_type=f32) + b2_ref[...]
    h2 = jnp.maximum(h2, 0.0)                               # (M, H2)

    # --- global max-pool feature per batch element ---
    g = jnp.max(h2.reshape(Bb, N, H2), axis=1)              # (Bb, H2)

    # --- fused pooled-feature projection (ONE matmul):
    #     lanes 0..32  -> per-point global term, lanes 64..77 -> global heads ---
    r = jnp.dot(g, wgl_ref[...], preferred_element_type=f32) + bgl_ref[...]   # (Bb, 128)
    # translation head is an offset from the centroid: add it on lanes 72..74
    center_row = center.reshape(Bb, 3)
    r = r + jnp.concatenate(
        [jnp.zeros((Bb, TR_OFF), f32), center_row,
         jnp.zeros((Bb, GL_SLAB - TR_OFF - 3), f32)], axis=-1)

    # --- per-point head: already lane-dense (weights zero-padded to 128 cols) ---
    ph = jnp.dot(h2, wpl_ref[...], preferred_element_type=f32) + bp_ref[...]  # (M, 128)
    ph = ph.reshape(Bb, N, PP_SLAB) + r[:, None, :]          # add per-element global row
    # residual point reconstruction: add the raw points on lanes 0..2
    ph = ph + jnp.concatenate(
        [pc, jnp.zeros((Bb, N, PP_SLAB - 3), f32)], axis=-1)
    ph = ph.reshape(M, PP_SLAB)

    grp = grp_ref[...]                                      # (128,128) 0/1 block-diag groups
    lane = jax.lax.broadcasted_iota(jnp.int32, (1, PP_SLAB), 1)

    # grouped L2 normalization for face normals in ONE MXU matmul (G = sel @ sel.T)
    inv = jax.lax.rsqrt(jnp.dot(ph * ph, grp, preferred_element_type=f32) + 1e-8)
    is_nrm = (lane >= NRM_OFF) & (lane < NRM_OFF + 18)
    is_sig = (lane >= SIG_OFF) & (lane < SIG_OFF + 6)
    pp = jnp.where(is_nrm, ph * inv, jnp.where(is_sig, jax.nn.sigmoid(ph), ph))
    pp_ref[...] = pp.reshape(Bb, N, PP_SLAB).astype(pp_ref.dtype)   # single lane-dense store

    # --- global heads: same group matrix normalizes the two rotation vectors ---
    rinv = jax.lax.rsqrt(jnp.dot(r * r, grp, preferred_element_type=f32) + 1e-8)
    is_rot = (lane >= ROT_OFF) & (lane < ROT_OFF + 6)
    is_gsig = (lane >= CONF_OFF) & (lane < CONF_OFF + 2)
    gl = jnp.where(is_rot, r * rinv, jnp.where(is_gsig, jax.nn.sigmoid(r), r))
    gl_ref[...] = gl.reshape(Bb, 1, GL_SLAB).astype(gl_ref.dtype)


def _make_group_matrix():
    """128x128 block-diagonal 0/1 matrix: 3-lane groups at lanes 3..20 (face
    normals) and 64..69 (green/red rotation vectors)."""
    lane = jnp.arange(PP_SLAB, dtype=jnp.int32)
    gid = jnp.full((PP_SLAB,), -1, jnp.int32)
    gid = jnp.where((lane >= NRM_OFF) & (lane < NRM_OFF + 18), (lane - NRM_OFF) // 3, gid)
    gid = jnp.where((lane >= ROT_OFF) & (lane < ROT_OFF + 6), 6 + (lane - ROT_OFF) // 3, gid)
    same = (gid[:, None] == gid[None, :]) & (gid[:, None] >= 0)
    return same.astype(jnp.float32)


def _prepare_fused_weights(params):
    """Zero-pad / fuse the head weights to lane-dense 128-column matrices."""
    wpl = jnp.zeros((H2, PP_SLAB), jnp.float32).at[:, :PER_POINT_OUT].set(params['wp_local'])
    bp = jnp.zeros((1, PP_SLAB), jnp.float32).at[:, :PER_POINT_OUT].set(params['bp'])
    wgl = (jnp.zeros((H2, GL_SLAB), jnp.float32)
           .at[:, :PER_POINT_OUT].set(params['wp_global'])
           .at[:, GL_OFF:GL_OFF + GLOBAL_OUT].set(params['wg']))
    bgl = jnp.zeros((1, GL_SLAB), jnp.float32).at[:, GL_OFF:GL_OFF + GLOBAL_OUT].set(params['bg'])
    return wpl, bp, wgl, bgl


def init_posenet_params(key):
    ks = jax.random.split(key, 8)

    def glorot(k, shape):
        fan_in, fan_out = shape
        scale = jnp.sqrt(2.0 / (fan_in + fan_out))
        return (scale * jax.random.normal(k, shape)).astype(jnp.float32)

    return {
        'w1': glorot(ks[0], (3, H1)),
        'b1': jnp.zeros((1, H1), jnp.float32),
        'w2': glorot(ks[1], (H1, H2)),
        'b2': jnp.zeros((1, H2), jnp.float32),
        # wp pre-split: local (point feature) and global (pooled feature) halves
        'wp_local': glorot(ks[2], (H2, PER_POINT_OUT)),
        'wp_global': glorot(ks[3], (H2, PER_POINT_OUT)),
        'bp': jnp.zeros((1, PER_POINT_OUT), jnp.float32),
        'wg': glorot(ks[4], (H2, GLOBAL_OUT)),
        'bg': jnp.zeros((1, GLOBAL_OUT), jnp.float32),
    }


def posenet9d_pallas(PC, params):
    PC = PC.astype(jnp.float32)
    B, N, _ = PC.shape

    # batch blocking; force >= 2 grid steps when B >= 2 so the "parallel" batch
    # axis can shard across both TensorCores on v7x
    b_blk = max(1, min(MAX_B_BLK, pl.cdiv(B, 2)))
    n_blk = pl.cdiv(B, b_blk)
    b_pad = n_blk * b_blk
    if b_pad != B:
        PC_in = jnp.concatenate(
            [PC, jnp.zeros((b_pad - B, N, 3), jnp.float32)], axis=0)
    else:
        PC_in = PC

    wpl, bp, wgl, bgl = _prepare_fused_weights(params)
    grp = _make_group_matrix()

    def weight_spec(arr):
        return pl.BlockSpec(arr.shape, lambda b: (0,) * arr.ndim)

    in_specs = [
        pl.BlockSpec((b_blk, N, 3), lambda b: (b, 0, 0)),
        weight_spec(params['w1']), weight_spec(params['b1']),
        weight_spec(params['w2']), weight_spec(params['b2']),
        weight_spec(wpl), weight_spec(bp),
        weight_spec(wgl), weight_spec(bgl),
        weight_spec(grp),
    ]
    out_specs = (
        pl.BlockSpec((b_blk, N, PP_SLAB), lambda b: (b, 0, 0)),   # fused per-point slab
        pl.BlockSpec((b_blk, 1, GL_SLAB), lambda b: (b, 0, 0)),   # fused global slab
    )
    out_shapes = (
        jax.ShapeDtypeStruct((b_pad, N, PP_SLAB), jnp.bfloat16),  # bf16 halves HBM writeback
        jax.ShapeDtypeStruct((b_pad, 1, GL_SLAB), jnp.float32),
    )

    pp, gl = pl.pallas_call(
        _posenet_kernel,
        out_shape=out_shapes,
        grid_spec=pltpu.PrefetchScalarGridSpec(
            num_scalar_prefetch=0,
            grid=(n_blk,),
            in_specs=in_specs,
            out_specs=out_specs,
        ),
        compiler_params=pltpu.CompilerParams(
            dimension_semantics=("parallel",),          # shards batch blocks across TCs
            vmem_limit_bytes=48 * 1024 * 1024,
        ),
    )(PC_in, params['w1'], params['b1'], params['w2'], params['b2'],
      wpl, bp, wgl, bgl, grp)

    # slice the fused slabs back into heads (drop batch padding, upcast to f32)
    pp = pp[:B]
    gl = gl[:B, 0]
    recon = pp[:, :, 0:3].astype(jnp.float32)
    fn_flat = pp[:, :, NRM_OFF:NRM_OFF + 18].astype(jnp.float32)
    face_dis = pp[:, :, DIS_OFF:DIS_OFF + 6].astype(jnp.float32)
    face_f = pp[:, :, SIG_OFF:SIG_OFF + 6].astype(jnp.float32)
    p_green_R = gl[:, ROT_OFF:ROT_OFF + 3]
    p_red_R = gl[:, ROT_OFF + 3:ROT_OFF + 6]
    f_green_R = gl[:, CONF_OFF]
    f_red_R = gl[:, CONF_OFF + 1]
    Pred_T = gl[:, TR_OFF:TR_OFF + 3]
    Pred_s = gl[:, SZ_OFF:SZ_OFF + 3]
    return (recon, fn_flat, face_dis, face_f,
            p_green_R, p_red_R, f_green_R, f_red_R, Pred_T, Pred_s)


def pose_estimator_forward(params, PC, obj_id=None, gt_R=None, gt_t=None, gt_s=None):
    """Mirrors Pose_Estimator.forward with FLAGS.train=False, do_loss=False,
    FLAGS.save_info=0: runs PoseNet9D on PC and returns the output_dict."""
    PC = jax.lax.stop_gradient(PC)  # PC = PC.detach()

    (recon, fn_flat, face_dis, face_f,
     p_green_R, p_red_R, f_green_R, f_red_R, Pred_T, Pred_s) = posenet9d_pallas(PC, params)

    B, N, _ = PC.shape
    output_dict = {
        'mask': None,
        'sketch': None,
        'recon': recon,                                   # (B, N, 3)
        'PC': PC,                                         # (B, N, 3)
        'face_normal': fn_flat.reshape(B, N, 6, 3),       # (B, N, 6, 3)
        'face_dis': face_dis,                             # (B, N, 6)
        'face_f': face_f,                                 # (B, N, 6)
        'p_green_R': p_green_R,                           # (B, 3)
        'p_red_R': p_red_R,                               # (B, 3)
        'f_green_R': f_green_R,                           # (B,)
        'f_red_R': f_red_R,                               # (B,)
        'Pred_T': Pred_T,                                 # (B, 3)
        'Pred_s': Pred_s,                                 # (B, 3)
        'gt_R': gt_R,
        'gt_t': gt_t,
        'gt_s': gt_s,
    }
    return output_dict


if __name__ == "__main__":
    key = jax.random.PRNGKey(0)
    k_param, k_pc = jax.random.split(key)

    params = init_posenet_params(k_param)

    B = 2
    PC = jax.random.normal(k_pc, (B, N_POINTS, 3), dtype=jnp.float32)
    obj_id = jnp.arange(B, dtype=jnp.int32)

    out = pose_estimator_forward(params, PC, obj_id=obj_id)
    jax.block_until_ready(out['recon'])
    jax.block_until_ready(out['Pred_T'])

    # sanity: finite outputs, unit-norm rotation vectors, correct head shapes
    assert bool(jnp.all(jnp.isfinite(out['recon'])))
    assert bool(jnp.all(jnp.isfinite(out['face_normal'])))
    norms = jnp.linalg.norm(out['p_green_R'], axis=-1)
    assert bool(jnp.all(jnp.abs(norms - 1.0) < 1e-3))
    fn_norms = jnp.linalg.norm(out['face_normal'], axis=-1)
    assert bool(jnp.all(jnp.abs(fn_norms - 1.0) < 1e-2))
    assert out['face_normal'].shape == (B, N_POINTS, 6, 3)
    assert out['face_dis'].shape == (B, N_POINTS, 6)
    assert out['face_f'].shape == (B, N_POINTS, 6)
    assert out['Pred_T'].shape == (B, 3)
    assert out['Pred_s'].shape == (B, 3)
    assert out['f_green_R'].shape == (B,)

    print("KERNEL_OK")
</pallas_src>

<mosaic_0001>
module attributes {stable_mosaic.version = 11 : i64} {
  func.func @_posenet_kernel(%arg0: i32, %arg1: memref<1x128x3xf32, #tpu.memory_space<vmem>>, %arg2: memref<3x64xf32, #tpu.memory_space<vmem>>, %arg3: memref<1x64xf32, #tpu.memory_space<vmem>>, %arg4: memref<64x128xf32, #tpu.memory_space<vmem>>, %arg5: memref<1x128xf32, #tpu.memory_space<vmem>>, %arg6: memref<128x128xf32, #tpu.memory_space<vmem>>, %arg7: memref<1x128xf32, #tpu.memory_space<vmem>>, %arg8: memref<128x128xf32, #tpu.memory_space<vmem>>, %arg9: memref<1x128xf32, #tpu.memory_space<vmem>>, %arg10: memref<128x128xf32, #tpu.memory_space<vmem>>, %arg11: memref<1x128x128xbf16, #tpu.memory_space<vmem>>, %arg12: memref<1x1x128xf32, #tpu.memory_space<vmem>>) attributes {dimension_semantics = [#tpu.dimension_semantics<parallel>], iteration_bounds = array<i64: 2>, scalar_prefetch = 0 : i64, scratch_operands = 0 : i64, tpu.core_type = #tpu.core_type<tc>, window_params = [{transform_indices = @transform_0, window_bounds = array<i64: 1, 128, 3>}, {pipeline_mode = #tpu.pipeline_mode<synchronous>, transform_indices = @transform_1, window_bounds = array<i64: 3, 64>}, {pipeline_mode = #tpu.pipeline_mode<synchronous>, transform_indices = @transform_2, window_bounds = array<i64: 1, 64>}, {pipeline_mode = #tpu.pipeline_mode<synchronous>, transform_indices = @transform_3, window_bounds = array<i64: 64, 128>}, {pipeline_mode = #tpu.pipeline_mode<synchronous>, transform_indices = @transform_4, window_bounds = array<i64: 1, 128>}, {pipeline_mode = #tpu.pipeline_mode<synchronous>, transform_indices = @transform_5, window_bounds = array<i64: 128, 128>}, {pipeline_mode = #tpu.pipeline_mode<synchronous>, transform_indices = @transform_6, window_bounds = array<i64: 1, 128>}, {pipeline_mode = #tpu.pipeline_mode<synchronous>, transform_indices = @transform_7, window_bounds = array<i64: 128, 128>}, {pipeline_mode = #tpu.pipeline_mode<synchronous>, transform_indices = @transform_8, window_bounds = array<i64: 1, 128>}, {pipeline_mode = #tpu.pipeline_mode<synchronous>, transform_indices = @transform_9, window_bounds = array<i64: 128, 128>}, {transform_indices = @transform_10, window_bounds = array<i64: 1, 128, 128>}, {transform_indices = @transform_11, window_bounds = array<i64: 1, 1, 128>}]} {
    %c0 = arith.constant 0 : index
    %c0_0 = arith.constant 0 : index
    %c0_1 = arith.constant 0 : index
    %0 = vector.load %arg1[%c0, %c0_0, %c0_1] : memref<1x128x3xf32, #tpu.memory_space<vmem>>, vector<1x128x3xf32>
    %cst = arith.constant dense<0.000000e+00> : vector<1x3xf32>
    %1 = vector.multi_reduction <add>, %0, %cst [1] : vector<1x128x3xf32> to vector<1x3xf32>
    %2 = vector.shape_cast %1 : vector<1x3xf32> to vector<1x1x3xf32>
    %cst_2 = arith.constant 1.280000e+02 : f32
    %3 = vector.broadcast %cst_2 : f32 to vector<1x1x3xf32>
    %4 = arith.divf %2, %3 : vector<1x1x3xf32>
    %5 = vector.broadcast %4 : vector<1x1x3xf32> to vector<1x128x3xf32>
    %6 = arith.subf %0, %5 : vector<1x128x3xf32>
    %7 = vector.shape_cast %6 : vector<1x128x3xf32> to vector<128x3xf32>
    %c0_3 = arith.constant 0 : index
    %c0_4 = arith.constant 0 : index
    %8 = vector.load %arg2[%c0_3, %c0_4] : memref<3x64xf32, #tpu.memory_space<vmem>>, vector<3x64xf32>
    %9 = vector.extract_strided_slice %7 {offsets = [0, 0], sizes = [128, 1], strides = [1, 1]} : vector<128x3xf32> to vector<128x1xf32>
    %10 = vector.extract_strided_slice %8 {offsets = [0, 0], sizes = [1, 64], strides = [1, 1]} : vector<3x64xf32> to vector<1x64xf32>
    %11 = vector.broadcast %9 : vector<128x1xf32> to vector<128x64xf32>
    %12 = vector.broadcast %10 : vector<1x64xf32> to vector<128x64xf32>
    %13 = arith.mulf %11, %12 : vector<128x64xf32>
    %14 = vector.extract_strided_slice %7 {offsets = [0, 1], sizes = [128, 1], strides = [1, 1]} : vector<128x3xf32> to vector<128x1xf32>
    %15 = vector.extract_strided_slice %8 {offsets = [1, 0], sizes = [1, 64], strides = [1, 1]} : vector<3x64xf32> to vector<1x64xf32>
    %16 = vector.broadcast %14 : vector<128x1xf32> to vector<128x64xf32>
    %17 = vector.broadcast %15 : vector<1x64xf32> to vector<128x64xf32>
    %18 = arith.mulf %16, %17 : vector<128x64xf32>
    %19 = arith.addf %13, %18 : vector<128x64xf32>
    %20 = vector.extract_strided_slice %7 {offsets = [0, 2], sizes = [128, 1], strides = [1, 1]} : vector<128x3xf32> to vector<128x1xf32>
    %21 = vector.extract_strided_slice %8 {offsets = [2, 0], sizes = [1, 64], strides = [1, 1]} : vector<3x64xf32> to vector<1x64xf32>
    %22 = vector.broadcast %20 : vector<128x1xf32> to vector<128x64xf32>
    %23 = vector.broadcast %21 : vector<1x64xf32> to vector<128x64xf32>
    %24 = arith.mulf %22, %23 : vector<128x64xf32>
    %25 = arith.addf %19, %24 : vector<128x64xf32>
    %c0_5 = arith.constant 0 : index
    %c0_6 = arith.constant 0 : index
    %26 = vector.load %arg3[%c0_5, %c0_6] : memref<1x64xf32, #tpu.memory_space<vmem>>, vector<1x64xf32>
    %27 = vector.broadcast %26 : vector<1x64xf32> to vector<128x64xf32>
    %28 = arith.addf %25, %27 : vector<128x64xf32>
    %cst_7 = arith.constant 0.000000e+00 : f32
    %29 = vector.broadcast %cst_7 : f32 to vector<128x64xf32>
    %30 = arith.maximumf %28, %29 : vector<128x64xf32>
    %c0_8 = arith.constant 0 : index
    %c0_9 = arith.constant 0 : index
    %31 = vector.load %arg4[%c0_8, %c0_9] : memref<64x128xf32, #tpu.memory_space<vmem>>, vector<64x128xf32>
    %cst_10 = arith.constant dense<0.000000e+00> : vector<128x128xf32>
    %32 = tpu.matmul %30, %31, %cst_10 {dimension_numbers = #tpu.dot_dimension_numbers<[1], [0], [0], [1], [0, 0, 1, 1], [], []>} : vector<128x64xf32>, vector<64x128xf32>, vector<128x128xf32> -> vector<128x128xf32>
    %c0_11 = arith.constant 0 : index
    %c0_12 = arith.constant 0 : index
    %33 = vector.load %arg5[%c0_11, %c0_12] : memref<1x128xf32, #tpu.memory_space<vmem>>, vector<1x128xf32>
    %34 = vector.broadcast %33 : vector<1x128xf32> to vector<128x128xf32>
    %35 = arith.addf %32, %34 : vector<128x128xf32>
    %cst_13 = arith.constant 0.000000e+00 : f32
    %36 = vector.broadcast %cst_13 : f32 to vector<128x128xf32>
    %37 = arith.maximumf %35, %36 : vector<128x128xf32>
    %38 = vector.shape_cast %37 : vector<128x128xf32> to vector<1x128x128xf32>
    %cst_14 = arith.constant dense<0xFF800000> : vector<1x128xf32>
    %39 = vector.multi_reduction <maximumf>, %38, %cst_14 [1] : vector<1x128x128xf32> to vector<1x128xf32>
    %c0_15 = arith.constant 0 : index
    %c0_16 = arith.constant 0 : index
    %40 = vector.load %arg8[%c0_15, %c0_16] : memref<128x128xf32, #tpu.memory_space<vmem>>, vector<128x128xf32>
    %cst_17 = arith.constant dense<0.000000e+00> : vector<1x128xf32>
    %41 = tpu.matmul %39, %40, %cst_17 {dimension_numbers = #tpu.dot_dimension_numbers<[1], [0], [0], [1], [0, 0, 1, 1], [], []>} : vector<1x128xf32>, vector<128x128xf32>, vector<1x128xf32> -> vector<1x128xf32>
    %c0_18 = arith.constant 0 : index
    %c0_19 = arith.constant 0 : index
    %42 = vector.load %arg9[%c0_18, %c0_19] : memref<1x128xf32, #tpu.memory_space<vmem>>, vector<1x128xf32>
    %43 = arith.addf %41, %42 : vector<1x128xf32>
    %44 = vector.shape_cast %4 : vector<1x1x3xf32> to vector<1x3xf32>
    %cst_20 = arith.constant 0.000000e+00 : f32
    %45 = vector.broadcast %cst_20 : f32 to vector<1x72xf32>
    %cst_21 = arith.constant 0.000000e+00 : f32
    %46 = vector.broadcast %cst_21 : f32 to vector<1x53xf32>
    %47 = tpu.concatenate %45, %44, %46 in 1 : vector<1x72xf32>, vector<1x3xf32>, vector<1x53xf32> -> vector<1x128xf32>
    %48 = arith.addf %43, %47 : vector<1x128xf32>
    %c0_22 = arith.constant 0 : index
    %c0_23 = arith.constant 0 : index
    %49 = vector.load %arg6[%c0_22, %c0_23] : memref<128x128xf32, #tpu.memory_space<vmem>>, vector<128x128xf32>
    %cst_24 = arith.constant dense<0.000000e+00> : vector<128x128xf32>
    %50 = tpu.matmul %37, %49, %cst_24 {dimension_numbers = #tpu.dot_dimension_numbers<[1], [0], [0], [1], [0, 0, 1, 1], [], []>} : vector<128x128xf32>, vector<128x128xf32>, vector<128x128xf32> -> vector<128x128xf32>
    %c0_25 = arith.constant 0 : index
    %c0_26 = arith.constant 0 : index
    %51 = vector.load %arg7[%c0_25, %c0_26] : memref<1x128xf32, #tpu.memory_space<vmem>>, vector<1x128xf32>
    %52 = vector.broadcast %51 : vector<1x128xf32> to vector<128x128xf32>
    %53 = arith.addf %50, %52 : vector<128x128xf32>
    %54 = vector.shape_cast %53 : vector<128x128xf32> to vector<1x128x128xf32>
    %55 = vector.shape_cast %48 : vector<1x128xf32> to vector<1x1x128xf32>
    %56 = vector.broadcast %55 : vector<1x1x128xf32> to vector<1x128x128xf32>
    %57 = arith.addf %54, %56 : vector<1x128x128xf32>
    %cst_27 = arith.constant 0.000000e+00 : f32
    %58 = vector.broadcast %cst_27 : f32 to vector<1x128x125xf32>
    %59 = tpu.concatenate %0, %58 in 2 : vector<1x128x3xf32>, vector<1x128x125xf32> -> vector<1x128x128xf32>
    %60 = arith.addf %57, %59 : vector<1x128x128xf32>
    %61 = vector.shape_cast %60 : vector<1x128x128xf32> to vector<128x128xf32>
    %c0_28 = arith.constant 0 : index
    %c0_29 = arith.constant 0 : index
    %62 = vector.load %arg10[%c0_28, %c0_29] : memref<128x128xf32, #tpu.memory_space<vmem>>, vector<128x128xf32>
    %63 = tpu.iota {dimensions = array<i32: 1>} : vector<1x128xi32>
    %64 = arith.mulf %61, %61 : vector<128x128xf32>
    %cst_30 = arith.constant dense<0.000000e+00> : vector<128x128xf32>
    %65 = tpu.matmul %64, %62, %cst_30 {dimension_numbers = #tpu.dot_dimension_numbers<[1], [0], [0], [1], [0, 0, 1, 1], [], []>} : vector<128x128xf32>, vector<128x128xf32>, vector<128x128xf32> -> vector<128x128xf32>
    %cst_31 = arith.constant 9.99999993E-9 : f32
    %66 = vector.broadcast %cst_31 : f32 to vector<128x128xf32>
    %67 = arith.addf %65, %66 : vector<128x128xf32>
    %68 = math.rsqrt %67 : vector<128x128xf32>
    %c3_i32 = arith.constant 3 : i32
    %69 = vector.broadcast %c3_i32 : i32 to vector<1x128xi32>
    %70 = arith.cmpi sge, %63, %69 : vector<1x128xi32>
    %c21_i32 = arith.constant 21 : i32
    %71 = vector.broadcast %c21_i32 : i32 to vector<1x128xi32>
    %72 = arith.cmpi slt, %63, %71 : vector<1x128xi32>
    %73 = arith.andi %70, %72 : vector<1x128xi1>
    %c27_i32 = arith.constant 27 : i32
    %74 = vector.broadcast %c27_i32 : i32 to vector<1x128xi32>
    %75 = arith.cmpi sge, %63, %74 : vector<1x128xi32>
    %c33_i32 = arith.constant 33 : i32
    %76 = vector.broadcast %c33_i32 : i32 to vector<1x128xi32>
    %77 = arith.cmpi slt, %63, %76 : vector<1x128xi32>
    %78 = arith.andi %75, %77 : vector<1x128xi1>
    %79 = arith.mulf %61, %68 : vector<128x128xf32>
    %80 = arith.negf %61 : vector<128x128xf32>
    %81 = math.exp %80 : vector<128x128xf32>
    %cst_32 = arith.constant 1.000000e+00 : f32
    %82 = vector.broadcast %cst_32 : f32 to vector<128x128xf32>
    %83 = arith.addf %82, %81 : vector<128x128xf32>
    %84 = arith.divf %82, %83 : vector<128x128xf32>
    %85 = vector.shape_cast %78 : vector<1x128xi1> to vector<1x128xi1>
    %86 = vector.broadcast %85 : vector<1x128xi1> to vector<128x128xi1>
    %87 = arith.select %86, %84, %61 : vector<128x128xi1>, vector<128x128xf32>
    %88 = vector.shape_cast %73 : vector<1x128xi1> to vector<1x128xi1>
    %89 = vector.broadcast %88 : vector<1x128xi1> to vector<128x128xi1>
    %90 = arith.select %89, %79, %87 : vector<128x128xi1>, vector<128x128xf32>
    %91 = vector.shape_cast %90 : vector<128x128xf32> to vector<1x128x128xf32>
    %92 = arith.truncf %91 : vector<1x128x128xf32> to vector<1x128x128xbf16>
    %c0_33 = arith.constant 0 : index
    %c0_34 = arith.constant 0 : index
    %c0_35 = arith.constant 0 : index
    %93 = vector.load %arg11[%c0_33, %c0_34, %c0_35] : memref<1x128x128xbf16, #tpu.memory_space<vmem>>, vector<1x128x128xbf16>
    tpu.vector_store %arg11[%c0_33, %c0_34, %c0_35], %92 {strides = array<i32>} : memref<1x128x128xbf16, #tpu.memory_space<vmem>>, vector<1x128x128xbf16>,
    %94 = arith.mulf %48, %48 : vector<1x128xf32>
    %cst_36 = arith.constant dense<0.000000e+00> : vector<1x128xf32>
    %95 = tpu.matmul %94, %62, %cst_36 {dimension_numbers = #tpu.dot_dimension_numbers<[1], [0], [0], [1], [0, 0, 1, 1], [], []>} : vector<1x128xf32>, vector<128x128xf32>, vector<1x128xf32> -> vector<1x128xf32>
    %cst_37 = arith.constant 9.99999993E-9 : f32
    %96 = vector.broadcast %cst_37 : f32 to vector<1x128xf32>
    %97 = arith.addf %95, %96 : vector<1x128xf32>
    %98 = math.rsqrt %97 : vector<1x128xf32>
    %c64_i32 = arith.constant 64 : i32
    %99 = vector.broadcast %c64_i32 : i32 to vector<1x128xi32>
    %100 = arith.cmpi sge, %63, %99 : vector<1x128xi32>
    %c70_i32 = arith.constant 70 : i32
    %101 = vector.broadcast %c70_i32 : i32 to vector<1x128xi32>
    %102 = arith.cmpi slt, %63, %101 : vector<1x128xi32>
    %103 = arith.andi %100, %102 : vector<1x128xi1>
    %c70_i32_38 = arith.constant 70 : i32
    %104 = vector.broadcast %c70_i32_38 : i32 to vector<1x128xi32>
    %105 = arith.cmpi sge, %63, %104 : vector<1x128xi32>
    %c72_i32 = arith.constant 72 : i32
    %106 = vector.broadcast %c72_i32 : i32 to vector<1x128xi32>
    %107 = arith.cmpi slt, %63, %106 : vector<1x128xi32>
    %108 = arith.andi %105, %107 : vector<1x128xi1>
    %109 = arith.mulf %48, %98 : vector<1x128xf32>
    %110 = arith.negf %48 : vector<1x128xf32>
    %111 = math.exp %110 : vector<1x128xf32>
    %cst_39 = arith.constant 1.000000e+00 : f32
    %112 = vector.broadcast %cst_39 : f32 to vector<1x128xf32>
    %113 = arith.addf %112, %111 : vector<1x128xf32>
    %114 = arith.divf %112, %113 : vector<1x128xf32>
    %115 = arith.select %108, %114, %48 : vector<1x128xi1>, vector<1x128xf32>
    %116 = arith.select %103, %109, %115 : vector<1x128xi1>, vector<1x128xf32>
    %117 = vector.shape_cast %116 : vector<1x128xf32> to vector<1x1x128xf32>
    %c0_40 = arith.constant 0 : index
    %c0_41 = arith.constant 0 : index
    %c0_42 = arith.constant 0 : index
    %118 = vector.load %arg12[%c0_40, %c0_41, %c0_42] : memref<1x1x128xf32, #tpu.memory_space<vmem>>, vector<1x1x128xf32>
    tpu.vector_store %arg12[%c0_40, %c0_41, %c0_42], %117 {strides = array<i32>} : memref<1x1x128xf32, #tpu.memory_space<vmem>>, vector<1x1x128xf32>,
    return
  }
  func.func @transform_0(%arg0: i32) -> (i32, i32, i32) {
    %c0_i32 = arith.constant 0 : i32
    %c0_i32_0 = arith.constant 0 : i32
    %c0_i32_1 = arith.constant 0 : i32
    return %arg0, %c0_i32, %c0_i32_0 : i32, i32, i32
  }
  func.func @transform_1(%arg0: i32) -> (i32, i32) {
    %c0_i32 = arith.constant 0 : i32
    %c0_i32_0 = arith.constant 0 : i32
    %c0_i32_1 = arith.constant 0 : i32
    return %c0_i32, %c0_i32_0 : i32, i32
  }
  func.func @transform_2(%arg0: i32) -> (i32, i32) {
    %c0_i32 = arith.constant 0 : i32
    %c0_i32_0 = arith.constant 0 : i32
    %c0_i32_1 = arith.constant 0 : i32
    return %c0_i32, %c0_i32_0 : i32, i32
  }
  func.func @transform_3(%arg0: i32) -> (i32, i32) {
    %c0_i32 = arith.constant 0 : i32
    %c0_i32_0 = arith.constant 0 : i32
    %c0_i32_1 = arith.constant 0 : i32
    return %c0_i32, %c0_i32_0 : i32, i32
  }
  func.func @transform_4(%arg0: i32) -> (i32, i32) {
    %c0_i32 = arith.constant 0 : i32
    %c0_i32_0 = arith.constant 0 : i32
    %c0_i32_1 = arith.constant 0 : i32
    return %c0_i32, %c0_i32_0 : i32, i32
  }
  func.func @transform_5(%arg0: i32) -> (i32, i32) {
    %c0_i32 = arith.constant 0 : i32
    %c0_i32_0 = arith.constant 0 : i32
    %c0_i32_1 = arith.constant 0 : i32
    return %c0_i32, %c0_i32_0 : i32, i32
  }
  func.func @transform_6(%arg0: i32) -> (i32, i32) {
    %c0_i32 = arith.constant 0 : i32
    %c0_i32_0 = arith.constant 0 : i32
    %c0_i32_1 = arith.constant 0 : i32
    return %c0_i32, %c0_i32_0 : i32, i32
  }
  func.func @transform_7(%arg0: i32) -> (i32, i32) {
    %c0_i32 = arith.constant 0 : i32
    %c0_i32_0 = arith.constant 0 : i32
    %c0_i32_1 = arith.constant 0 : i32
    return %c0_i32, %c0_i32_0 : i32, i32
  }
  func.func @transform_8(%arg0: i32) -> (i32, i32) {
    %c0_i32 = arith.constant 0 : i32
    %c0_i32_0 = arith.constant 0 : i32
    %c0_i32_1 = arith.constant 0 : i32
    return %c0_i32, %c0_i32_0 : i32, i32
  }
  func.func @transform_9(%arg0: i32) -> (i32, i32) {
    %c0_i32 = arith.constant 0 : i32
    %c0_i32_0 = arith.constant 0 : i32
    %c0_i32_1 = arith.constant 0 : i32
    return %c0_i32, %c0_i32_0 : i32, i32
  }
  func.func @transform_10(%arg0: i32) -> (i32, i32, i32) {
    %c0_i32 = arith.constant 0 : i32
    %c0_i32_0 = arith.constant 0 : i32
    %c0_i32_1 = arith.constant 0 : i32
    return %arg0, %c0_i32, %c0_i32_0 : i32, i32, i32
  }
  func.func @transform_11(%arg0: i32) -> (i32, i32, i32) {
    %c0_i32 = arith.constant 0 : i32
    %c0_i32_0 = arith.constant 0 : i32
    %c0_i32_1 = arith.constant 0 : i32
    return %arg0, %c0_i32, %c0_i32_0 : i32, i32, i32
  }
}

</mosaic_0001>

<bundles_post_ra>
// kernel: tpu_custom_call.1
= control target key start
LH: loop header
LB: loop body
LE: loop exit
PB: predicated region body
PF: predicated region fallthrough
CT: control target
= control target key end

     0   :  { %s3901_s0 = inlined_call_operand.vmem [shape: f32[2,128,3], index: 0, kind: input, shape index: {}]   ;;  %s3902_s1 = inlined_call_operand.vmem [shape: f32[3,64], index: 1, kind: input, shape index: {}]   ;;  %s3903_s2 = inlined_call_operand.vmem [shape: f32[1,64], index: 2, kind: input, shape index: {}]   ;;  %s3904_s3 = inlined_call_operand.hbm [shape: f32[64,128], index: 3, kind: input, shape index: {}]   ;;  %s3905_s4 = inlined_call_operand.vmem [shape: f32[1,128], index: 4, kind: input, shape index: {}]   ;;  %s3906_s5 = inlined_call_operand.vmem [shape: f32[128,128], index: 5, kind: input, shape index: {}]   ;;  %s3907_s6 = inlined_call_operand.vmem [shape: f32[1,128], index: 6, kind: input, shape index: {}]   ;;  %s3908_s7 = inlined_call_operand.vmem [shape: f32[128,128], index: 7, kind: input, shape index: {}]   ;;  %s3909_s8 = inlined_call_operand.vmem [shape: f32[1,128], index: 8, kind: input, shape index: {}]   ;;  %s3910_s9 = inlined_call_operand.hbm [shape: f32[128,128], index: 9, kind: input, shape index: {}]   ;;  %s3911_s10 = inlined_call_operand.hbm [shape: bf16[2,128,128], index: 10, kind: output, shape index: {0}]   ;;  %s3912_s11 = inlined_call_operand.hbm [shape: f32[2,1,128], index: 11, kind: output, shape index: {1}]  }
   0x1   :  { %3914 = sst [smem:[#allocation15_spill]] %s3901_s0 }
   0x2   :  { %3915 = sst [smem:[#allocation16_spill]] %s3902_s1 }
   0x3   :  { %17 = vsyncpa [#allocation3], 0 }
   0x4   :  { %18 = vsyncpa [#allocation6], 0 }
   0x5   :  { %19 = vsyncpa [#allocation4], 0 }
   0x6   :  { %21 = vsyncpa [#allocation4 + $0x1], 0 }
   0x7   :  { %22 = vsyncpa [#allocation9], 0 }
   0x8   :  { %24 = vsyncpa [#allocation9 + $0x1], 0  ;;  %s2952_s17 = smov 0   ;;  %s2954_s18 = smov 0  }
   0x9   :  { %s2956_s19 = smov 0   ;;  %s2958_s20 = smov 0  }
   0xa LB: > { %s2973_s21 = sadd.s32 4294967295, %s2876_s20   ;;  %s2043_s22 = sadd.s32 4294967294, %s2876_s20   ;;  %s2876_s20 = sphi %s2958_s20, %s3940_s20   ;;  %s2872_s19 = sphi %s2956_s19, %s3939_s19   ;;  %s2868_s18 = sphi %s2954_s18, %s3938_s18   ;;  %s2864_s17 = sphi %s2952_s17, %s3937_s17  }
   0xb   : > { %s2977_s23 = sadd.s32 1, %s2876_s20   ;;  %s252_s24 = sadd.s32 1, %s2872_s19 }
   0xc   : > { %s249_s25 = ssub.s32 %s2876_s20, %s2977_s23  ;;  %p262_p0 = scmp.ne.s32.totalorder %s2872_s19, %s2868_s18 }
   0xd   : > { %p250_p1 = scmp.eq.s32.totalorder %s249_s25, 0  ;;  %p263_p2 = scmp.eq.s32.totalorder %s2973_s21, 1 }
   0xe   : > { %p268_p3 = scmp.ne.s32.totalorder %s2868_s18, %s2864_s17  ;;  %p269_p4 = scmp.eq.s32.totalorder %s2043_s22, 1 }
   0xf   : > { %s2988_s26 = scalar_select %p250_p1, %s2872_s19, %s252_s24  }
  0x10   : > { %p2990_p5 = por %p263_p2, %p262_p0  ;;  %p2994_p6 = por %p269_p4, %p268_p3 }
  0x11   : > { %3916 = sst [smem:[#allocation14_spill]] %s2988_s26  ;;  %p2044_p7 = scmp.ge.s32.totalorder %s2876_s20, 1 }
  0x12   : > { %s3918_s28 = scalar_select %p2994_p6, 1, 0 }
  0x13   : > { %p302_p8 = scmp.lt.s32.totalorder %s2876_s20, 3  ;;  %p3913_p9 = scmp.eq.s32.totalorder %s2973_s21, 0 }
  0x14   : > { %s2878_s30 = smov [#allocation2]   ;;  %s2879_s14 = smov [#allocation5]  }
  0x15   : > { %p3001_p10 = pnand %p2044_p7, %p302_p8  ;;  %s320_s12 = sshll.u32 %s2878_s30, 4  ;;  %s321_s12 = int_to_ptr.vmem [resolvable:$true] %s320_s12 }
  0x16   : > { %s348_s15 = sshll.u32 %s2879_s14, 4  ;;  %s2737_s16 = scalar_lea.vmem %s321_s12, 1024  ;;  %s349_s15 = int_to_ptr.vmem [resolvable:$true] %s348_s15 }
  0x17   : > { %p2533_p11 = pneg %p3001_p10  ;;  %p2738_p0 = scmp.ne.s32.totalorder %s321_s12, %s2737_s16 }
  0x18   : > { %p2745_p3 = scmp.lt.s32.totalorder %s321_s12, %s321_s12  ;;  %p2746_p4 = scmp.lt.s32.totalorder %s2737_s16, %s2737_s16 }
  0x19   : > { %p3009_p12 = pnand %p3913_p9, %p2533_p11 }
  0x1a   : > { %p2747_p7 = por %p2746_p4, %p2745_p3 }
  0x1b   : > { %p2728_p13 = pneg %p3009_p12 }
  0x1d   : > { %p2740_p1 = pnand %p2738_p0, %p2728_p13 }
  0x1f   : > { %p2741_p2 = pneg %p2740_p1 }
  0x21   : > { %p2748_p8 = pnand %p2747_p7, %p2741_p2 }
  0x23   : > { %2751 = shalt.err (!%p2748_p8)
}
  0x24   : > { %s2880_s22 = smov 128   ;;  %s2881_s24 = smov 8  }
  0x25   : > { %2536 = dma.hbm_to_vmem [thread:$0]  (!%p3009_p12), %s3904_s3, 1024, %s321_s12, [#allocation3], %s2880_s22, %s2880_s22, %s2881_s24  }
  0x26   : > { %s2763_s14 = scalar_lea.vmem %s349_s15, 2048  ;;  %p2771_p9 = scmp.lt.s32.totalorder %s349_s15, %s349_s15 }
  0x27   : > { %p2764_p11 = scmp.ne.s32.totalorder %s349_s15, %s2763_s14  ;;  %p2772_p6 = scmp.lt.s32.totalorder %s2763_s14, %s2763_s14 }
  0x29   : > { %p2766_p0 = pnand %p2764_p11, %p2728_p13  ;;  %p2773_p3 = por %p2772_p6, %p2771_p9 }
  0x2b   : > { %p2767_p1 = pneg %p2766_p0 }
  0x2d   : > { %p2774_p2 = pnand %p2773_p3, %p2767_p1 }
  0x2f   : > { %2777 = shalt.err (!%p2774_p2)
}
  0x30   : > { %2539 = dma.hbm_to_vmem [thread:$0]  (!%p3009_p12), %s3910_s9, 2048, %s349_s15, [#allocation6], %s2880_s22, %s2880_s22, %s2881_s24  }
  0x31   : > { %372 = sbr.rel (%p3001_p10) target bundleno = 1081 (0x439), region = 60  ;;  %p3921_p4 = scmp.eq.s32.totalorder (!%p3001_p10), %s2973_s21, 0 }
  0x36   : > { %2847 = dma.done.wait (%p3921_p4), [#allocation3], 1024   ;;  %p3922_p13 = pmov %p3921_p4 }
  0x37   : > { %p3923_p7 = pmov %p3921_p4 }
  0x38   : > { %2849 = vsyncadd (%p3922_p13), [#allocation3], 4294966272 }
  0x39   : > { %2851 = dma.done.wait (%p3923_p7), [#allocation6], 2048   ;;  %p3924_p6 = pmov %p3921_p4 }
  0x3a   : > { %p420_p9 = scmp.lt.s32.totalorder %s2973_s21, 1  ;;  %v2882_v0 = vmov 0   ;;  %s3925_s0 = sld [smem:[#allocation15_spill]]  ;;  %vm441_vm0 = vcmask 23552   ;;  %v2883_v57 = vmov 1   ;;  %v2884_v59 = vmov 2  }
  0x3b   : > { %2853 = vsyncadd (%p3924_p6), [#allocation6], 4294965248  ;;  %2598 = vset.pattern.permute.xlu1 %v2882_v0  ;;  %2596 = vset.pattern.permute.xlu0 %v2882_v0  ;;  %s3926_s1 = sld [smem:[#allocation16_spill]]  ;;  %vm852_vm1 = vcmask 523264   ;;  %vm2886_vm2 = vmmov 0   ;;  %s2887_s14 = smov 72  }
  0x3c   : > { %s421_s26 = scalar_select %p420_p9, %s2973_s21, 1  ;;  %vm1174_vm3 = vcmask 588800   ;;  %vm1176_vm4 = vcmask 613376  }
  0x3d   : > { %s3641_s13 = sand.u32 1, %s2868_s18  }
  0x3e   : > { %s2112_s29 = sshll.u32 %s421_s26, 7  ;;  %s419_s22 = scalar_lea.vmem [#allocation8], %s3641_s13 }
  0x3f   : > { %s1934_s24 = sshll.u32 %s419_s22, 4  ;;  %s1906_s16 = scalar_lea.sflag [#allocation9], %s3641_s13  ;;  %s3682_s24 = int_to_ptr.vmem [resolvable:$true] %s1934_s24 }
  0x40   : > { %s3048_s15 = scalar_lea.vmem %s3925_s0, %s2112_s29  ;;  %s2778_s26 = scalar_lea.vmem %s3682_s24, 16 }
  0x41   : > { %v425_v1 = vld [vmem:[%s3048_s15] sm:$0xff]  ;;  %v426_v2 = vld [vmem:[%s3048_s15 + $0x8] sm:$0xff]  ;;  %v3053_v3 = vld [vmem:[%s3048_s15 + $0x10] sm:$0xff]  ;;  %p2779_p10 = scmp.ne.s32.totalorder %s3682_s24, %s2778_s26  ;;  %s2888_s29 = smov [#allocation8]  }
  0x42   : > { %v428_v4 = vld [vmem:[%s3048_s15 + $0x18] sm:$0xff]  ;;  %v3057_v5 = vsel %vm441_vm0, %v425_v1, 0.0  ;;  %v3060_v6 = vsel %vm441_vm0, %v426_v2, 0.0  ;;  %v3064_v7 = vsel %vm441_vm0, %v3053_v3, 0.0  ;;  %v3067_v8 = vld [vmem:[%s3048_s15 + $0x20] sm:$0xff]  ;;  %v430_v11 = vld [vmem:[%s3048_s15 + $0x28] sm:$0xff] }
  0x43   : > { %v444_v9 = vadd.f32 %v3060_v6, %v3057_v5  ;;  %v3072_v10 = vsel %vm441_vm0, %v428_v4, 0.0  ;;  %v3078_v13 = vsel %vm441_vm0, %v3067_v8, 0.0  ;;  %v3081_v14 = vld [vmem:[%s3048_s15 + $0x30] sm:$0xff]  ;;  %v3085_v16 = vsel %vm441_vm0, %v430_v11, 0.0  ;;  %v432_v17 = vld [vmem:[%s3048_s15 + $0x38] sm:$0xff]  ;;  %v3094_v20 = vld [vmem:[%s3048_s15 + $0x40] sm:$0xff]  ;;  %p2780_p12 = pnand %p2779_p10, %p2990_p5 }
  0x44   : > { %v3091_v19 = vsel %vm441_vm0, %v3081_v14, 0.0  ;;  %v3098_v22 = vsel %vm441_vm0, %v432_v17, 0.0  ;;  %v434_v23 = vld [vmem:[%s3048_s15 + $0x48] sm:$0xff]  ;;  %v3104_v25 = vsel %vm441_vm0, %v3094_v20, 0.0  ;;  %v3107_v26 = vld [vmem:[%s3048_s15 + $0x50] sm:$0xff]  ;;  %v436_v29 = vld [vmem:[%s3048_s15 + $0x58] sm:$0xff] }
  0x45   : > { %v446_v12 = vadd.f32 %v3064_v7, %v444_v9  ;;  %v3111_v28 = vsel %vm441_vm0, %v434_v23, 0.0  ;;  %v3117_v31 = vsel %vm441_vm0, %v3107_v26, 0.0  ;;  %v3120_v32 = vld [vmem:[%s3048_s15 + $0x60] sm:$0xff]  ;;  %v3124_v34 = vsel %vm441_vm0, %v436_v29, 0.0  ;;  %v438_v35 = vld [vmem:[%s3048_s15 + $0x68] sm:$0xff]  ;;  %v3133_v38 = vld [vmem:[%s3048_s15 + $0x70] sm:$0xff]  ;;  %p2781_p8 = pneg %p2780_p12 }
  0x46   : > { %v3130_v37 = vsel %vm441_vm0, %v3120_v32, 0.0  ;;  %v3137_v40 = vsel %vm441_vm0, %v438_v35, 0.0  ;;  %v440_v41 = vld [vmem:[%s3048_s15 + $0x78] sm:$0xff]  ;;  %v3143_v43 = vsel %vm441_vm0, %v3133_v38, 0.0  ;;  %s2109_s15 = sshll.u32 %s2973_s21, 4  ;;  %s2782_s12 = sshll.u32 %s2888_s29, 4  ;;  %s2783_s12 = int_to_ptr.vmem [resolvable:$false] %s2782_s12 }
  0x47   : > { %v448_v15 = vadd.f32 %v3072_v10, %v446_v12  ;;  %v3147_v45 = vsel %vm441_vm0, %v440_v41, 0.0  ;;  %v842_v12 = vld [vmem:[#allocation2 + $0x28] sm:$0xff]  ;;  %p2785_p11 = scmp.lt.s32.totalorder %s3682_s24, %s2783_s12 }
  0x49   : > { %v450_v18 = vadd.f32 %v3078_v13, %v448_v15  ;;  %v841_v15 = vld [vmem:[#allocation2 + $0x20] sm:$0xff] }
  0x4b   : > { %v452_v21 = vadd.f32 %v3085_v16, %v450_v18  ;;  %v839_v18 = vld [vmem:[#allocation2 + $0x10] sm:$0xff] }
  0x4d   : > { %v454_v24 = vadd.f32 %v3091_v19, %v452_v21  ;;  %v837_v21 = vld [vmem:[#allocation2] sm:$0xff] }
  0x4f   : > { %v456_v27 = vadd.f32 %v3098_v22, %v454_v24 }
  0x51   : > { %v458_v30 = vadd.f32 %v3104_v25, %v456_v27 }
  0x53   : > { %v460_v33 = vadd.f32 %v3111_v28, %v458_v30  ;;  %v497_v30 = vld [vmem:[%s3926_s1] sm:$0x7] }
  0x55   : > { %v462_v36 = vadd.f32 %v3117_v31, %v460_v33 }
  0x57   : > { %v464_v39 = vadd.f32 %v3124_v34, %v462_v36 }
  0x59   : > { %v466_v42 = vadd.f32 %v3130_v37, %v464_v39 }
  0x5b   : > { %v468_v44 = vadd.f32 %v3137_v40, %v466_v42 }
  0x5d   : > { %v470_v46 = vadd.f32 %v3143_v43, %v468_v44 }
  0x5f   : > { %v472_v47 = vadd.f32 %v3147_v45, %v470_v46 }
  0x61   : > { %v473_v48 = vrot.slane %v472_v47, 4 }
  0x63   : > { %v474_v49 = vadd.f32 %v473_v48, %v472_v47 }
  0x65   : > { %v475_v50 = vrot.slane %v474_v49, 2 }
  0x67   : > { %v476_v51 = vadd.f32 %v475_v50, %v474_v49 }
  0x69   : > { %v477_v52 = vrot.slane %v476_v51, 1 }
  0x6b   : > { %v478_v53 = vadd.f32 %v477_v52, %v476_v51 }
  0x6d   : > { %v3151_v54 = vmul.f32 0.0078125, %v478_v53  ;;  %v3243_v53 = vld [vmem:[%s3903_s2] ss:$0 sm:$0xff] }
  0x6f   : > { %v482_v55 = vsub.f32 %v426_v2, %v3151_v54  ;;  %v481_v56 = vsub.f32 %v425_v1, %v3151_v54  ;;  %v484_v58 = vsub.f32 %v428_v4, %v3151_v54  ;;  %v486_v60 = vsub.f32 %v430_v11, %v3151_v54  ;;  %v843_v4 = vld [vmem:[#allocation2 + $0x30] sm:$0xff] }
  0x70   : > { %v483_v61 = vsub.f32 %v3053_v3, %v3151_v54  ;;  %v488_v62 = vsub.f32 %v432_v17, %v3151_v54  ;;  %v3166_v63 = vsub.f32 %v434_v23, %v3151_v54  ;;  %v3171_v1 = vsub.f32 %v436_v29, %v3151_v54  ;;  %v844_v3 = vld [vmem:[#allocation2 + $0x38] sm:$0xff] }
  0x71   : > { %505 = vperm.xlu1 %2598, %v482_v55   ;;  %500 = vperm.xlu0 %2596, %v481_v56   ;;  %v3175_v2 = vsub.f32 %v438_v35, %v3151_v54  ;;  %v485_v9 = vsub.f32 %v3067_v8, %v3151_v54  ;;  %v3182_v11 = vsub.f32 %v440_v41, %v3151_v54  ;;  %v840_v17 = vld [vmem:[#allocation2 + $0x18] sm:$0xff]  ;;  %v838_v8 = vld [vmem:[#allocation2 + $0x8] sm:$0xff] }
  0x72   : > { %2299 = vmatprep.subr.mxu0 %v844_v3  ;;  %v487_v23 = vsub.f32 %v3081_v14, %v3151_v54  ;;  %v489_v14 = vsub.f32 %v3094_v20, %v3151_v54  ;;  %v491_v24 = vsub.f32 %v3107_v26, %v3151_v54  ;;  %v493_v20 = vsub.f32 %v3120_v32, %v3151_v54 }
  0x73   : > { %2300 = vmatpush3.msra.mxu0 %v844_v3  ;;  %v578_v26 = vlaneseq  ;;  %v495_v36 = vsub.f32 %v3133_v38, %v3151_v54 }
  0x74   : > { %2301 = vmatprep.subr.mxu0 %v843_v4 }
  0x75   : > { %2599 = vset.pattern.permute.xlu1 %v2883_v57  ;;  %2597 = vset.pattern.permute.xlu0 %v2883_v57  ;;  %v3215_v27 = vshrl.u32 %v578_v26, 7 }
  0x76   : > { %603 = vperm.xlu1 %2599, %v482_v55   ;;  %599 = vperm.xlu0 %2597, %v481_v56  }
  0x77   : > { %2302 = vmatpush3.msra.mxu0 %v843_v4  ;;  %v580_v29 = vsub.s32 0, %v3215_v27  ;;  %v664_v35 = vsub.s32 1, %v3215_v27  ;;  %v764_v41 = vsub.s32 2, %v3215_v27 }
  0x78   : > { %2303 = vmatprep.subr.mxu0 %v842_v12 }
  0x79   : > { %2304 = vmatpush3.msra.mxu0 %v842_v12  ;;  %v3228_v39 = vrot.slane %v497_v30, %v580_v29  ;;  %v3231_v42 = vrot.slane %v497_v30, %v664_v35  ;;  %v3236_v49 = vrot.slane %v497_v30, %v764_v41 }
  0x7a   : > { %2600 = vset.pattern.permute.xlu1 %v2884_v59  ;;  %2603 = vset.pattern.permute.xlu0 %v2882_v0 }
  0x7b   : > { %699 = vperm.xlu1 %2600, %v481_v56   ;;  %515 = vperm.xlu0 %2603, %v484_v58  }
  0x7c   : > { %2305 = vmatprep.subr.mxu0 %v841_v15 }
  0x7d   : > { %2306 = vmatpush3.msra.mxu0 %v841_v15 }
  0x7e   : > { %2307 = vmatprep.subr.mxu0 %v840_v17 }
  0x7f   : > { %2601 = vset.pattern.permute.xlu1 %v2882_v0  ;;  %525 = vperm.xlu0 %2603, %v486_v60  }
  0x80   : > { %510 = vperm.xlu1 %2601, %v483_v61   ;;  %2308 = vmatpush3.msra.mxu0 %v840_v17 }
  0x81   : > { %2309 = vmatprep.subr.mxu0 %v839_v18 }
  0x82   : > { %2310 = vmatpush3.msra.mxu0 %v839_v18 }
  0x83   : > { %535 = vperm.xlu0 %2603, %v488_v62   ;;  %2311 = vmatprep.subr.mxu0 %v838_v8 }
  0x84   : > { %2602 = vset.pattern.permute.xlu1 %v2883_v57  ;;  %2312 = vmatpush3.msra.mxu0 %v838_v8 }
  0x85   : > { %607 = vperm.xlu1 %2602, %v483_v61   ;;  %2313 = vmatprep.subr.mxu0 %v837_v21 }
  0x86   : > { %2314 = vmatpush3.msra.mxu0 %v837_v21 }
  0x87   : > { %545 = vperm.xlu0 %2603, %v3166_v63  }
  0x89   : > { %611 = vperm.xlu1 %2602, %v484_v58  }
  0x8b   : > { %555 = vperm.xlu0 %2603, %v3171_v1  }
  0x8d   : > { %2604 = vset.pattern.permute.xlu1 %v2884_v59 }
  0x8e   : > { %707 = vperm.xlu1 %2604, %v483_v61  }
  0x8f   : > { %565 = vperm.xlu0 %2603, %v3175_v2  }
  0x92   : > { %2605 = vset.pattern.permute.xlu1 %v2882_v0 }
  0x93   : > { %520 = vperm.xlu1 %2605, %v485_v9   ;;  %575 = vperm.xlu0 %2603, %v3182_v11  }
  0x97   : > { %2606 = vset.pattern.permute.xlu1 %v2883_v57  ;;  %2622 = vset.pattern.permute.xlu0 %v2884_v59 }
  0x98   : > { %615 = vperm.xlu1 %2606, %v485_v9   ;;  %703 = vperm.xlu0 %2622, %v482_v55  }
  0x9c   : > { %619 = vperm.xlu1 %2606, %v486_v60   ;;  %711 = vperm.xlu0 %2622, %v484_v58  }
  0xa0   : > { %2607 = vset.pattern.permute.xlu1 %v2884_v59  ;;  %719 = vperm.xlu0 %2622, %v486_v60  }
  0xa1   : > { %715 = vperm.xlu1 %2607, %v485_v9  }
  0xa4   : > { %727 = vperm.xlu0 %2622, %v488_v62  }
  0xa5   : > { %2608 = vset.pattern.permute.xlu1 %v2882_v0 }
  0xa6   : > { %530 = vperm.xlu1 %2608, %v487_v23  }
  0xa8   : > { %735 = vperm.xlu0 %2622, %v3166_v63  }
  0xaa   : > { %2609 = vset.pattern.permute.xlu1 %v2883_v57 }
  0xab   : > { %623 = vperm.xlu1 %2609, %v487_v23  }
  0xac   : > { %743 = vperm.xlu0 %2622, %v3171_v1  }
  0xaf   : > { %627 = vperm.xlu1 %2609, %v488_v62  }
  0xb0   : > { %751 = vperm.xlu0 %2622, %v3175_v2  }
  0xb3   : > { %2610 = vset.pattern.permute.xlu1 %v2884_v59 }
  0xb4   : > { %723 = vperm.xlu1 %2610, %v487_v23   ;;  %759 = vperm.xlu0 %2622, %v3182_v11  }
  0xb8   : > { %2611 = vset.pattern.permute.xlu1 %v2882_v0 }
  0xb9   : > { %540 = vperm.xlu1 %2611, %v489_v14  }
  0xbd   : > { %2612 = vset.pattern.permute.xlu1 %v2883_v57 }
  0xbe   : > { %631 = vperm.xlu1 %2612, %v489_v14  }
  0xc2   : > { %635 = vperm.xlu1 %2612, %v3166_v63  }
  0xc6   : > { %2613 = vset.pattern.permute.xlu1 %v2884_v59 }
  0xc7   : > { %731 = vperm.xlu1 %2613, %v489_v14  }
  0xcb   : > { %2614 = vset.pattern.permute.xlu1 %v2882_v0 }
  0xcc   : > { %550 = vperm.xlu1 %2614, %v491_v24  }
  0xd0   : > { %2615 = vset.pattern.permute.xlu1 %v2883_v57 }
  0xd1   : > { %639 = vperm.xlu1 %2615, %v491_v24  }
  0xd5   : > { %643 = vperm.xlu1 %2615, %v3171_v1   ;;  %v1194_v1 = vld [vmem:[%s3906_s5 + $0x78] sm:$0xff] }
  0xd6   : > { %2374 = vmatprep.subr.mxu0 %v1194_v1 }
  0xd9   : > { %2616 = vset.pattern.permute.xlu1 %v2884_v59 }
  0xda   : > { %739 = vperm.xlu1 %2616, %v491_v24  }
  0xde   : > { %2617 = vset.pattern.permute.xlu1 %v2882_v0 }
  0xdf   : > { %560 = vperm.xlu1 %2617, %v493_v20  }
  0xe3   : > { %2618 = vset.pattern.permute.xlu1 %v2883_v57 }
  0xe4   : > { %647 = vperm.xlu1 %2618, %v493_v20  }
  0xe8   : > { %651 = vperm.xlu1 %2618, %v3175_v2  }
  0xec   : > { %v506_v33 = vpop.permute.xlu1 %505  ;;  %2619 = vset.pattern.permute.xlu1 %v2884_v59  ;;  %v501_v32 = vpop.permute.xlu0 %500 }
  0xed   : > { %747 = vperm.xlu1 %2619, %v493_v20   ;;  %v582_v44 = vmul.f32 %v3228_v39, %v501_v32  ;;  %v583_v8 = vmul.f32 %v3228_v39, %v506_v33 }
  0xf1   : > { %v604_v46 = vpop.permute.xlu1 %603  ;;  %2620 = vset.pattern.permute.xlu1 %v2882_v0  ;;  %v600_v47 = vpop.permute.xlu0 %599 }
  0xf2   : > { %570 = vperm.xlu1 %2620, %v495_v36   ;;  %v666_v48 = vmul.f32 %v3231_v42, %v600_v47  ;;  %v667_v17 = vmul.f32 %v3231_v42, %v604_v46 }
  0xf4   : > { %v682_v38 = vadd.f32 %v666_v48, %v582_v44  ;;  %v683_v24 = vadd.f32 %v667_v17, %v583_v8  ;;  %v1191_v8 = vld [vmem:[%s3906_s5 + $0x60] sm:$0xff] }
  0xf6   : > { %2621 = vset.pattern.permute.xlu1 %v2883_v57  ;;  %v700_v50 = vpop.permute.xlu1 %699  ;;  %v516_v51 = vpop.permute.xlu0 %515 }
  0xf7   : > { %v766_v52 = vmul.f32 %v3236_v49, %v700_v50  ;;  %655 = vperm.xlu1 %2621, %v495_v36   ;;  %v585_v20 = vmul.f32 %v3228_v39, %v516_v51 }
  0xf9   : > { %v782_v0 = vadd.f32 %v766_v52, %v682_v38 }
  0xfa   : > { %v526_v55 = vpop.permute.xlu0 %525 }
  0xfb   : > { %659 = vperm.xlu1 %2621, %v3182_v11   ;;  %v511_v56 = vpop.permute.xlu1 %510  ;;  %v805_v58 = vadd.f32 %v3243_v53, %v782_v0 }
  0xfc   : > { %v584_v12 = vmul.f32 %v3228_v39, %v511_v56 }
  0xfd   : > { %v821_v60 = vmax.f32 %v805_v58, 0.0 }
  0xfe   : > { %v3247_v57 = vpop.permute.xlu0 %535 }
  0xff   : > { %2623 = vset.pattern.permute.xlu1 %v2884_v59  ;;  %2315 = vmatprep.mubr.msk.f32.mxu0 %vm852_vm1, %v821_v60 }
 0x100   : > { %755 = vperm.xlu1 %2623, %v495_v36   ;;  %v608_v61 = vpop.permute.xlu1 %607  ;;  %v587_v36 = vmul.f32 %v3228_v39, %v526_v55  ;;  %v1193_v55 = vld [vmem:[%s3906_s5 + $0x70] sm:$0xff] }
 0x101   : > { %v668_v9 = vmul.f32 %v3231_v42, %v608_v61 }
 0x102   : > { %v3251_v62 = vpop.permute.xlu0 %545 }
 0x103   : > { %v684_v18 = vadd.f32 %v668_v9, %v584_v12 }
 0x104   : > { %v612_v63 = vpop.permute.xlu1 %611  ;;  %1171 = vrot.lane.b32.xlu1 %v3151_v54, %s2887_s14  ;;  %s3680_s14 = scalar_lea.hbm %s3912_s11, %s2109_s15  ;;  %s2784_s15 = scalar_lea.vmem %s2783_s12, 32 }
 0x105   : > { %v669_v30 = vmul.f32 %v3231_v42, %v612_v63  ;;  %p2786_p0 = scmp.lt.s32.totalorder %s2784_s15, %s2778_s26 }
 0x106   : > { %v3256_v2 = vpop.permute.xlu0 %555 }
 0x107   : > { %v685_v47 = vadd.f32 %v669_v30, %v585_v20  ;;  %v1189_v20 = vld [vmem:[%s3906_s5 + $0x50] sm:$0xff]  ;;  %p2787_p1 = por %p2786_p0, %p2785_p11 }
 0x109   : > { %v708_v3 = vpop.permute.xlu1 %707  ;;  %p2788_p3 = pnand %p2787_p1, %p2781_p8 }
 0x10a   : > { %v3258_v4 = vpop.permute.xlu0 %565  ;;  %v768_v15 = vmul.f32 %v3236_v49, %v708_v3 }
 0x10c   : > { %v784_v21 = vadd.f32 %v768_v15, %v684_v18 }
 0x10e   : > { %v521_v59 = vpop.permute.xlu1 %520  ;;  %v3261_v11 = vpop.permute.xlu0 %575  ;;  %v807_v41 = vadd.f32 %v3243_v53, %v784_v21 }
 0x10f   : > { %v586_v56 = vmul.f32 %v3228_v39, %v521_v59  ;;  %v1192_v59 = vld [vmem:[%s3906_s5 + $0x68] sm:$0xff] }
 0x110   : > { %v823_v0 = vmax.f32 %v807_v41, 0.0 }
 0x113   : > { %v616_v23 = vpop.permute.xlu1 %615  ;;  %v704_v14 = vpop.permute.xlu0 %703 }
 0x114   : > { %v767_v32 = vmul.f32 %v3236_v49, %v704_v14  ;;  %v670_v50 = vmul.f32 %v3231_v42, %v616_v23  ;;  %v1190_v14 = vld [vmem:[%s3906_s5 + $0x58] sm:$0xff] }
 0x116   : > { %v783_v35 = vadd.f32 %v767_v32, %v683_v24  ;;  %v686_v9 = vadd.f32 %v670_v50, %v586_v56  ;;  %v1188_v32 = vld [vmem:[%s3906_s5 + $0x48] sm:$0xff] }
 0x117   : > { %v620_v44 = vpop.permute.xlu1 %619  ;;  %v712_v46 = vpop.permute.xlu0 %711 }
 0x118   : > { %v806_v33 = vadd.f32 %v3243_v53, %v783_v35  ;;  %v671_v48 = vmul.f32 %v3231_v42, %v620_v44  ;;  %v769_v38 = vmul.f32 %v3236_v49, %v712_v46  ;;  %v589_v44 = vmul.f32 %v3228_v39, %v3247_v57  ;;  %v1186_v46 = vld [vmem:[%s3906_s5 + $0x38] sm:$0xff] }
 0x11a   : > { %v822_v51 = vmax.f32 %v806_v33, 0.0  ;;  %v785_v52 = vadd.f32 %v769_v38, %v685_v47  ;;  %v687_v60 = vadd.f32 %v671_v48, %v587_v36  ;;  %v1187_v36 = vld [vmem:[%s3906_s5 + $0x40] sm:$0xff]  ;;  %v1185_v38 = vld [vmem:[%s3906_s5 + $0x30] sm:$0xff] }
 0x11b   : > { %v720_v58 = vpop.permute.xlu0 %719 }
 0x11c   : > { %v808_v61 = vadd.f32 %v3243_v53, %v785_v52  ;;  %v771_v63 = vmul.f32 %v3236_v49, %v720_v58  ;;  %v716_v3 = vpop.permute.xlu1 %715  ;;  %2316 = vmatmul.mubr.msk.f32.vlgmr.msra.gmra.mxu0 %vm852_vm1, %v822_v51  ;;  %v1184_v51 = vld [vmem:[%s3906_s5 + $0x28] sm:$0xff]  ;;  %v1183_v58 = vld [vmem:[%s3906_s5 + $0x20] sm:$0xff] }
 0x11d   : > { %v770_v12 = vmul.f32 %v3236_v49, %v716_v3  ;;  %2318 = vmatprep.mubr.msk.f32.mxu0 %vm852_vm1, %v823_v0  ;;  %2375 = vmatpush3.msra.mxu0 %v1194_v1 }
 0x11e   : > { %v824_v15 = vmax.f32 %v808_v61, 0.0  ;;  %v787_v17 = vadd.f32 %v771_v63, %v687_v60  ;;  %2376 = vmatprep.subr.mxu0 %v1193_v55 }
 0x11f   : > { %v786_v18 = vadd.f32 %v770_v12, %v686_v9  ;;  %2377 = vmatpush3.msra.mxu0 %v1193_v55  ;;  %v728_v41 = vpop.permute.xlu0 %727 }
 0x120   : > { %v810_v21 = vadd.f32 %v3243_v53, %v787_v17  ;;  %2319 = vmatmul.mubr.msk.f32.gmra.mxu0 %vm852_vm1, %v824_v15  ;;  %2378 = vmatprep.subr.mxu0 %v1192_v59  ;;  %v773_v48 = vmul.f32 %v3236_v49, %v728_v41 }
 0x121   : > { %v809_v1 = vadd.f32 %v3243_v53, %v786_v18  ;;  %v531_v23 = vpop.permute.xlu1 %530  ;;  %2379 = vmatpush3.msra.mxu0 %v1192_v59  ;;  %v591_v18 = vmul.f32 %v3228_v39, %v3251_v62 }
 0x122   : > { %2380 = vmatprep.subr.mxu0 %v1191_v8  ;;  %v826_v30 = vmax.f32 %v810_v21, 0.0  ;;  %v588_v52 = vmul.f32 %v3228_v39, %v531_v23 }
 0x123   : > { %v825_v24 = vmax.f32 %v809_v1, 0.0  ;;  %2381 = vmatpush3.msra.mxu0 %v1191_v8  ;;  %v736_v17 = vpop.permute.xlu0 %735 }
 0x124   : > { %2382 = vmatprep.subr.mxu0 %v1190_v14  ;;  %v775_v1 = vmul.f32 %v3236_v49, %v736_v17  ;;  %v1181_v17 = vld [vmem:[%s3906_s5 + $0x10] sm:$0xff] }
 0x125   : > { %2321 = vmatprep.mubr.msk.f32.mxu0 %vm852_vm1, %v825_v24  ;;  %2383 = vmatpush3.msra.mxu0 %v1190_v14 }
 0x126   : > { %v624_v35 = vpop.permute.xlu1 %623  ;;  %2322 = vmatmul.mubr.msk.f32.gmra.mxu0 %vm852_vm1, %v826_v30  ;;  %2384 = vmatprep.subr.mxu0 %v1189_v20 }
 0x127   : > { %2385 = vmatpush3.msra.mxu0 %v1189_v20  ;;  %v672_v50 = vmul.f32 %v3231_v42, %v624_v35 }
 0x128   : > { %2386 = vmatprep.subr.mxu0 %v1188_v32 }
 0x129   : > { %2387 = vmatpush3.msra.mxu0 %v1188_v32  ;;  %v688_v55 = vadd.f32 %v672_v50, %v588_v52  ;;  %v593_v50 = vmul.f32 %v3228_v39, %v3256_v2 }
 0x12a   : > { %v628_v47 = vpop.permute.xlu1 %627  ;;  %2388 = vmatprep.subr.mxu0 %v1187_v36 }
 0x12b   : > { %v673_v33 = vmul.f32 %v3231_v42, %v628_v47  ;;  %2389 = vmatpush3.msra.mxu0 %v1187_v36 }
 0x12c   : > { %2390 = vmatprep.subr.mxu0 %v1186_v46 }
 0x12d   : > { %v689_v57 = vadd.f32 %v673_v33, %v589_v44  ;;  %2391 = vmatpush3.msra.mxu0 %v1186_v46 }
 0x12e   : > { %2392 = vmatprep.subr.mxu0 %v1185_v38 }
 0x12f   : > { %v789_v0 = vadd.f32 %v773_v48, %v689_v57  ;;  %v724_v56 = vpop.permute.xlu1 %723  ;;  %2393 = vmatpush3.msra.mxu0 %v1185_v38  ;;  %v744_v48 = vpop.permute.xlu0 %743 }
 0x130   : > { %v772_v60 = vmul.f32 %v3236_v49, %v724_v56  ;;  %2394 = vmatprep.subr.mxu0 %v1184_v51 }
 0x131   : > { %2395 = vmatpush3.msra.mxu0 %v1184_v51  ;;  %v812_v63 = vadd.f32 %v3243_v53, %v789_v0  ;;  %v777_v51 = vmul.f32 %v3236_v49, %v744_v48 }
 0x132   : > { %v788_v61 = vadd.f32 %v772_v60, %v688_v55  ;;  %2396 = vmatprep.subr.mxu0 %v1183_v58 }
 0x133   : > { %2397 = vmatpush3.msra.mxu0 %v1183_v58  ;;  %v828_v59 = vmax.f32 %v812_v63, 0.0 }
 0x134   : > { %v811_v3 = vadd.f32 %v3243_v53, %v788_v61  ;;  %v541_v9 = vpop.permute.xlu1 %540 }
 0x135   : > { %v590_v24 = vmul.f32 %v3228_v39, %v541_v9 }
 0x136   : > { %v827_v12 = vmax.f32 %v811_v3, 0.0 }
 0x138   : > { %2324 = vmatprep.mubr.msk.f32.mxu0 %vm852_vm1, %v827_v12  ;;  %v1182_v12 = vld [vmem:[%s3906_s5 + $0x18] sm:$0xff] }
 0x139   : > { %v632_v15 = vpop.permute.xlu1 %631  ;;  %2325 = vmatmul.mubr.msk.f32.gmra.mxu0 %vm852_vm1, %v828_v59  ;;  %2398 = vmatprep.subr.mxu0 %v1182_v12 }
 0x13a   : > { %v674_v23 = vmul.f32 %v3231_v42, %v632_v15  ;;  %2399 = vmatpush3.msra.mxu0 %v1182_v12 }
 0x13b   : > { %2400 = vmatprep.subr.mxu0 %v1181_v17 }
 0x13c   : > { %v690_v32 = vadd.f32 %v674_v23, %v590_v24  ;;  %2401 = vmatpush3.msra.mxu0 %v1181_v17  ;;  %v595_v23 = vmul.f32 %v3228_v39, %v3258_v4  ;;  %v752_v24 = vpop.permute.xlu0 %751  ;;  %v1095_v17 = vld [vmem:[%s3908_s7 + $0x60] sm:$0xff] }
 0x13d   : > { %v636_v8 = vpop.permute.xlu1 %635 }
 0x13e   : > { %v675_v21 = vmul.f32 %v3231_v42, %v636_v8  ;;  %v1180_v8 = vld [vmem:[%s3906_s5 + $0x8] sm:$0xff] }
 0x13f   : > { %2402 = vmatprep.subr.mxu0 %v1180_v8 }
 0x140   : > { %v691_v14 = vadd.f32 %v675_v21, %v591_v18  ;;  %v1179_v21 = vld [vmem:[%s3906_s5] sm:$0xff]  ;;  %2403 = vmatpush3.msra.mxu0 %v1180_v8  ;;  %v1093_v8 = vld [vmem:[%s3908_s7 + $0x50] sm:$0xff] }
 0x141   : > { %2404 = vmatprep.subr.mxu0 %v1179_v21 }
 0x142   : > { %v791_v20 = vadd.f32 %v775_v1, %v691_v14  ;;  %v732_v30 = vpop.permute.xlu1 %731  ;;  %2405 = vmatpush3.msra.mxu0 %v1179_v21  ;;  %v1092_v21 = vld [vmem:[%s3908_s7 + $0x48] sm:$0xff] }
 0x143   : > { %v774_v35 = vmul.f32 %v3236_v49, %v732_v30  ;;  %v779_v30 = vmul.f32 %v3236_v49, %v752_v24  ;;  %v1088_v24 = vld [vmem:[%s3908_s7 + $0x28] sm:$0xff] }
 0x144   : > { %v814_v41 = vadd.f32 %v3243_v53, %v791_v20 }
 0x145   : > { %v790_v36 = vadd.f32 %v774_v35, %v690_v32 }
 0x146   : > { %v830_v47 = vmax.f32 %v814_v41, 0.0 }
 0x147   : > { %v813_v62 = vadd.f32 %v3243_v53, %v790_v36  ;;  %v551_v44 = vpop.permute.xlu1 %550 }
 0x148   : > { %v592_v56 = vmul.f32 %v3228_v39, %v551_v44 }
 0x149   : > { %v829_v46 = vmax.f32 %v813_v62, 0.0 }
 0x14b   : > { %2327 = vmatprep.mubr.msk.f32.mxu0 %vm852_vm1, %v829_v46 }
 0x14c   : > { %v640_v33 = vpop.permute.xlu1 %639  ;;  %2328 = vmatmul.mubr.msk.f32.gmra.mxu0 %vm852_vm1, %v830_v47 }
 0x14d   : > { %v676_v52 = vmul.f32 %v3231_v42, %v640_v33 }
 0x14f   : > { %v692_v60 = vadd.f32 %v676_v52, %v592_v56  ;;  %v597_v52 = vmul.f32 %v3228_v39, %v3261_v11 }
 0x150   : > { %v644_v38 = vpop.permute.xlu1 %643 }
 0x151   : > { %v677_v57 = vmul.f32 %v3231_v42, %v644_v38 }
 0x153   : > { %v693_v0 = vadd.f32 %v677_v57, %v593_v50  ;;  %v760_v57 = vpop.permute.xlu0 %759 }
 0x155   : > { %v793_v58 = vadd.f32 %v777_v51, %v693_v0  ;;  %v740_v55 = vpop.permute.xlu1 %739 }
 0x156   : > { %v776_v61 = vmul.f32 %v3236_v49, %v740_v55 }
 0x157   : > { %v816_v3 = vadd.f32 %v3243_v53, %v793_v58  ;;  %v781_v58 = vmul.f32 %v3236_v49, %v760_v57 }
 0x158   : > { %v792_v63 = vadd.f32 %v776_v61, %v692_v60 }
 0x159   : > { %v832_v15 = vmax.f32 %v816_v3, 0.0 }
 0x15a   : > { %v815_v9 = vadd.f32 %v3243_v53, %v792_v63  ;;  %v561_v2 = vpop.permute.xlu1 %560 }
 0x15b   : > { %v594_v35 = vmul.f32 %v3228_v39, %v561_v2 }
 0x15c   : > { %v831_v59 = vmax.f32 %v815_v9, 0.0 }
 0x15e   : > { %2330 = vmatprep.mubr.msk.f32.mxu0 %vm852_vm1, %v831_v59 }
 0x15f   : > { %v648_v18 = vpop.permute.xlu1 %647  ;;  %2331 = vmatmul.mubr.msk.f32.gmra.mxu0 %vm852_vm1, %v832_v15 }
 0x160   : > { %v678_v20 = vmul.f32 %v3231_v42, %v648_v18  ;;  %v1094_v18 = vld [vmem:[%s3908_s7 + $0x58] sm:$0xff] }
 0x162   : > { %v694_v62 = vadd.f32 %v678_v20, %v594_v35  ;;  %v1087_v20 = vld [vmem:[%s3908_s7 + $0x20] sm:$0xff]  ;;  %v1084_v35 = vld [vmem:[%s3908_s7 + $0x8] sm:$0xff] }
 0x163   : > { %v652_v1 = vpop.permute.xlu1 %651 }
 0x164   : > { %v679_v14 = vmul.f32 %v3231_v42, %v652_v1  ;;  %v1091_v1 = vld [vmem:[%s3908_s7 + $0x40] sm:$0xff] }
 0x166   : > { %v695_v32 = vadd.f32 %v679_v14, %v595_v23  ;;  %v1090_v23 = vld [vmem:[%s3908_s7 + $0x38] sm:$0xff]  ;;  %v1089_v14 = vld [vmem:[%s3908_s7 + $0x30] sm:$0xff] }
 0x168   : > { %v795_v36 = vadd.f32 %v779_v30, %v695_v32  ;;  %v748_v41 = vpop.permute.xlu1 %747  ;;  %v1086_v30 = vld [vmem:[%s3908_s7 + $0x18] sm:$0xff]  ;;  %v1085_v32 = vld [vmem:[%s3908_s7 + $0x10] sm:$0xff] }
 0x169   : > { %v778_v44 = vmul.f32 %v3236_v49, %v748_v41  ;;  %v3456_v41 = vld [vmem:[%s3905_s4] ss:$0 sm:$0xff] }
 0x16a   : > { %v818_v47 = vadd.f32 %v3243_v53, %v795_v36  ;;  %v1083_v36 = vld [vmem:[%s3908_s7] sm:$0xff] }
 0x16b   : > { %v794_v46 = vadd.f32 %v778_v44, %v694_v62 }
 0x16c   : > { %v834_v38 = vmax.f32 %v818_v47, 0.0 }
 0x16d   : > { %v817_v4 = vadd.f32 %v3243_v53, %v794_v46  ;;  %v571_v33 = vpop.permute.xlu1 %570 }
 0x16e   : > { %v596_v60 = vmul.f32 %v3228_v39, %v571_v33  ;;  %v1098_v39 = vld [vmem:[%s3908_s7 + $0x78] sm:$0xff] }
 0x16f   : > { %v833_v48 = vmax.f32 %v817_v4, 0.0 }
 0x171   : > { %2333 = vmatprep.mubr.msk.f32.mxu0 %vm852_vm1, %v833_v48 }
 0x172   : > { %v656_v50 = vpop.permute.xlu1 %655  ;;  %2334 = vmatmul.mubr.msk.f32.gmra.mxu0 %vm852_vm1, %v834_v38 }
 0x173   : > { %v680_v56 = vmul.f32 %v3231_v42, %v656_v50 }
 0x175   : > { %v696_v3 = vadd.f32 %v680_v56, %v596_v60 }
 0x176   : > { %v660_v51 = vpop.permute.xlu1 %659 }
 0x177   : > { %v681_v0 = vmul.f32 %v3231_v42, %v660_v51  ;;  %v2885_v42 = vmov 0.0  }
 0x178   : > { %2339 = vmatprep.subr.mxu1 %v2885_v42  ;;  %2486 = vmatprep.subr.mxu0 %v2885_v42 }
 0x179   : > { %v697_v55 = vadd.f32 %v681_v0, %v597_v52  ;;  %2340 = vmatpush3.msra.mxu1 %v1098_v39  ;;  %2371 = vmatprep.mubr.msk.f32.mxu1 %vm2886_vm2, %v2885_v42 }
 0x17a   : > { %2341 = vmatprep.subr.mxu1 %v2885_v42 }
 0x17b   : > { %v797_v61 = vadd.f32 %v781_v58, %v697_v55  ;;  %v756_v63 = vpop.permute.xlu1 %755 }
 0x17c   : > { %v780_v9 = vmul.f32 %v3236_v49, %v756_v63  ;;  %v1097_v49 = vld [vmem:[%s3908_s7 + $0x70] sm:$0xff] }
 0x17d   : > { %v820_v12 = vadd.f32 %v3243_v53, %v797_v61  ;;  %2342 = vmatpush3.msra.mxu1 %v1097_v49 }
 0x17e   : > { %v796_v2 = vadd.f32 %v780_v9, %v696_v3  ;;  %2343 = vmatprep.subr.mxu1 %v2885_v42 }
 0x17f   : > { %v836_v15 = vmax.f32 %v820_v12, 0.0 }
 0x180   : > { %v819_v59 = vadd.f32 %v3243_v53, %v796_v2  ;;  %v1096_v53 = vld [vmem:[%s3908_s7 + $0x68] sm:$0xff] }
 0x181   : > { %2344 = vmatpush3.msra.mxu1 %v1096_v53 }
 0x182   : > { %v835_v11 = vmax.f32 %v819_v59, 0.0  ;;  %2345 = vmatprep.subr.mxu1 %v2885_v42 }
 0x183   : > { %2346 = vmatpush3.msra.mxu1 %v1095_v17 }
 0x184   : > { %2336 = vmatprep.mubr.msk.f32.mxu0 %vm852_vm1, %v835_v11  ;;  %2347 = vmatprep.subr.mxu1 %v2885_v42 }
 0x185   : > { %2337 = vmatmul.mubr.msk.f32.gmra.mxu0 %vm852_vm1, %v836_v15  ;;  %2348 = vmatpush3.msra.mxu1 %v1094_v18 }
 0x186   : > { %2349 = vmatprep.subr.mxu1 %v2885_v42 }
 0x187   : > { %2350 = vmatpush3.msra.mxu1 %v1093_v8 }
 0x188   : > { %2351 = vmatprep.subr.mxu1 %v2885_v42 }
 0x189   : > { %2352 = vmatpush3.msra.mxu1 %v1092_v21 }
 0x18a   : > { %2353 = vmatprep.subr.mxu1 %v2885_v42 }
 0x18b   : > { %2354 = vmatpush3.msra.mxu1 %v1091_v1 }
 0x18c   : > { %2355 = vmatprep.subr.mxu1 %v2885_v42 }
 0x18d   : > { %2356 = vmatpush3.msra.mxu1 %v1090_v23 }
 0x18e   : > { %2357 = vmatprep.subr.mxu1 %v2885_v42 }
 0x18f   : > { %2358 = vmatpush3.msra.mxu1 %v1089_v14 }
 0x190   : > { %2359 = vmatprep.subr.mxu1 %v2885_v42 }
 0x191   : > { %2360 = vmatpush3.msra.mxu1 %v1088_v24 }
 0x192   : > { %2361 = vmatprep.subr.mxu1 %v2885_v42 }
 0x193   : > { %2362 = vmatpush3.msra.mxu1 %v1087_v20 }
 0x194   : > { %2363 = vmatprep.subr.mxu1 %v2885_v42 }
 0x195   : > { %2364 = vmatpush3.msra.mxu1 %v1086_v30 }
 0x196   : > { %2365 = vmatprep.subr.mxu1 %v2885_v42 }
 0x197   : > { %2366 = vmatpush3.msra.mxu1 %v1085_v32 }
 0x198   : > { %2367 = vmatprep.subr.mxu1 %v2885_v42 }
 0x199   : > { %2368 = vmatpush3.msra.mxu1 %v1084_v35 }
 0x19a   : > { %2369 = vmatprep.subr.mxu1 %v2885_v42 }
 0x19b   : > { %2370 = vmatpush3.msra.mxu1 %v1083_v36 }
 0x1dc   : > { %v2317_v62 = vpop.f32.mrf.mxu0 }
 0x1dd   : > { %v973_v44 = vadd.f32 %v2317_v62, %v3456_v41 }
 0x1de   : > { %v967_v46 = vpop.f32.mrf.mxu0 }
 0x1df   : > { %v968_v47 = vadd.f32 %v3456_v41, %v967_v46  ;;  %v1047_v48 = vmax.f32 %v973_v44, 0.0 }
 0x1e0   : > { %v2320_v4 = vpop.f32.mrf.mxu0 }
 0x1e1   : > { %v1046_v33 = vmax.f32 %v968_v47, 0.0  ;;  %v983_v38 = vadd.f32 %v2320_v4, %v3456_v41 }
 0x1e2   : > { %v977_v50 = vpop.f32.mrf.mxu0 }
 0x1e3   : > { %v978_v57 = vadd.f32 %v3456_v41, %v977_v50  ;;  %2406 = vmatprep.mubr.f32.mxu0 %v1046_v33  ;;  %v1049_v52 = vmax.f32 %v983_v38, 0.0 }
 0x1e4   : > { %2407 = vmatmul.mubr.f32.vlgmr.msra.gmra.mxu0 %v1047_v48 }
 0x1e5   : > { %v1048_v51 = vmax.f32 %v978_v57, 0.0 }
 0x1e6   : > { %v2323_v0 = vpop.f32.mrf.mxu0 }
 0x1e7   : > { %v993_v56 = vadd.f32 %v2323_v0, %v3456_v41  ;;  %2409 = vmatprep.mubr.f32.mxu0 %v1048_v51 }
 0x1e8   : > { %v987_v58 = vpop.f32.mrf.mxu0  ;;  %2410 = vmatmul.mubr.f32.gmra.mxu0 %v1049_v52 }
 0x1e9   : > { %v1051_v55 = vmax.f32 %v993_v56, 0.0  ;;  %v988_v60 = vadd.f32 %v3456_v41, %v987_v58 }
 0x1eb   : > { %v1063_v61 = vmax.f32 %v1047_v48, %v1051_v55  ;;  %v1050_v63 = vmax.f32 %v988_v60, 0.0 }
 0x1ed   : > { %v1062_v3 = vmax.f32 %v1046_v33, %v1050_v63  ;;  %2412 = vmatprep.mubr.f32.mxu0 %v1050_v63 }
 0x1ee   : > { %2413 = vmatmul.mubr.f32.gmra.mxu0 %v1051_v55 }
 0x1f9   : > { %v2326_v9 = vpop.f32.mrf.mxu0 }
 0x1fa   : > { %v1003_v2 = vadd.f32 %v2326_v9, %v3456_v41 }
 0x1fb   : > { %v997_v12 = vpop.f32.mrf.mxu0 }
 0x1fc   : > { %v1053_v59 = vmax.f32 %v1003_v2, 0.0  ;;  %v998_v11 = vadd.f32 %v3456_v41, %v997_v12 }
 0x1fe   : > { %v1065_v15 = vmax.f32 %v1049_v52, %v1053_v59  ;;  %v1052_v39 = vmax.f32 %v998_v11, 0.0 }
 0x200   : > { %v1064_v49 = vmax.f32 %v1048_v51, %v1052_v39  ;;  %2415 = vmatprep.mubr.f32.mxu0 %v1052_v39 }
 0x201   : > { %2416 = vmatmul.mubr.f32.gmra.mxu0 %v1053_v59 }
 0x20c   : > { %v2329_v53 = vpop.f32.mrf.mxu0 }
 0x20d   : > { %v1013_v17 = vadd.f32 %v2329_v53, %v3456_v41  ;;  %v1395_v53 = vld [vmem:[#allocation5 + $0x60] sm:$0xff] }
 0x20e   : > { %v1007_v18 = vpop.f32.mrf.mxu0 }
 0x20f   : > { %v1008_v8 = vadd.f32 %v3456_v41, %v1007_v18  ;;  %v1055_v1 = vmax.f32 %v1013_v17, 0.0  ;;  %v1394_v17 = vld [vmem:[#allocation5 + $0x58] sm:$0xff]  ;;  %v1393_v18 = vld [vmem:[#allocation5 + $0x50] sm:$0xff] }
 0x211   : > { %v1054_v21 = vmax.f32 %v1008_v8, 0.0  ;;  %v1067_v47 = vmax.f32 %v1063_v61, %v1055_v1  ;;  %v1392_v8 = vld [vmem:[#allocation5 + $0x48] sm:$0xff] }
 0x213   : > { %2418 = vmatprep.mubr.f32.mxu0 %v1054_v21  ;;  %v1066_v4 = vmax.f32 %v1062_v3, %v1054_v21  ;;  %v1391_v21 = vld [vmem:[#allocation5 + $0x40] sm:$0xff] }
 0x214   : > { %2419 = vmatmul.mubr.f32.gmra.mxu0 %v1055_v1  ;;  %v1390_v1 = vld [vmem:[#allocation5 + $0x38] sm:$0xff] }
 0x21f   : > { %v2332_v23 = vpop.f32.mrf.mxu0 }
 0x220   : > { %v1023_v14 = vadd.f32 %v2332_v23, %v3456_v41  ;;  %v1389_v23 = vld [vmem:[#allocation5 + $0x30] sm:$0xff] }
 0x221   : > { %v1017_v24 = vpop.f32.mrf.mxu0 }
 0x222   : > { %v1018_v20 = vadd.f32 %v3456_v41, %v1017_v24  ;;  %v1057_v32 = vmax.f32 %v1023_v14, 0.0  ;;  %v1388_v14 = vld [vmem:[#allocation5 + $0x28] sm:$0xff]  ;;  %v1387_v24 = vld [vmem:[#allocation5 + $0x20] sm:$0xff] }
 0x224   : > { %v1056_v30 = vmax.f32 %v1018_v20, 0.0  ;;  %v1069_v56 = vmax.f32 %v1065_v15, %v1057_v32  ;;  %v1397_v15 = vld [vmem:[#allocation5 + $0x70] sm:$0xff]  ;;  %v1386_v20 = vld [vmem:[#allocation5 + $0x18] sm:$0xff] }
 0x226   : > { %2421 = vmatprep.mubr.f32.mxu0 %v1056_v30  ;;  %v1068_v58 = vmax.f32 %v1064_v49, %v1056_v30  ;;  %v1396_v49 = vld [vmem:[#allocation5 + $0x68] sm:$0xff]  ;;  %v1385_v30 = vld [vmem:[#allocation5 + $0x10] sm:$0xff] }
 0x227   : > { %2422 = vmatmul.mubr.f32.gmra.mxu0 %v1057_v32  ;;  %v1384_v32 = vld [vmem:[#allocation5 + $0x8] sm:$0xff] }
 0x232   : > { %v2335_v35 = vpop.f32.mrf.mxu0 }
 0x233   : > { %v1033_v36 = vadd.f32 %v2335_v35, %v3456_v41  ;;  %v1383_v35 = vld [vmem:[#allocation5] sm:$0xff] }
 0x234   : > { %v1027_v62 = vpop.f32.mrf.mxu0 }
 0x235   : > { %v1059_v44 = vmax.f32 %v1033_v36, 0.0  ;;  %v1028_v46 = vadd.f32 %v3456_v41, %v1027_v62 }
 0x237   : > { %v1058_v33 = vmax.f32 %v1028_v46, 0.0  ;;  %v1071_v48 = vmax.f32 %v1067_v47, %v1059_v44 }
 0x239   : > { %v1070_v38 = vmax.f32 %v1066_v4, %v1058_v33  ;;  %2424 = vmatprep.mubr.f32.mxu0 %v1058_v33  ;;  %v1172_v33 = vpop.permute.xlu1 %1171 }
 0x23a   : > { %2425 = vmatmul.mubr.f32.gmra.mxu0 %v1059_v44 }
 0x23b   : > { %v1074_v50 = vmax.f32 %v1070_v38, %v1071_v48  ;;  %v1175_v38 = vsel %vm1174_vm3, 0.0, %v1172_v33 }
 0x245   : > { %v2338_v57 = vpop.f32.mrf.mxu0 }
 0x246   : > { %v1043_v51 = vadd.f32 %v2338_v57, %v3456_v41  ;;  %v1177_v57 = vsel %vm1176_vm4, %v1175_v38, 0.0 }
 0x247   : > { %v1037_v52 = vpop.f32.mrf.mxu0 }
 0x248   : > { %v1061_v54 = vmax.f32 %v1043_v51, 0.0  ;;  %v1038_v0 = vadd.f32 %v3456_v41, %v1037_v52  ;;  %v1398_v41 = vld [vmem:[#allocation5 + $0x78] sm:$0xff]  ;;  %v3499_v52 = vld [vmem:[%s3907_s6] ss:$0 sm:$0xff] }
 0x249   : > { %2487 = vmatpush3.msra.mxu0 %v1398_v41  ;;  %2430 = vmatprep.subr.mxu1 %v1398_v41 }
 0x24a   : > { %v1060_v55 = vmax.f32 %v1038_v0, 0.0  ;;  %v1073_v60 = vmax.f32 %v1069_v56, %v1061_v54  ;;  %2488 = vmatprep.subr.mxu0 %v2885_v42 }
 0x24b   : > { %2489 = vmatpush3.msra.mxu0 %v1397_v15 }
 0x24c   : > { %v1072_v63 = vmax.f32 %v1068_v58, %v1060_v55  ;;  %2427 = vmatprep.mubr.f32.mxu0 %v1060_v55  ;;  %2490 = vmatprep.subr.mxu0 %v2885_v42 }
 0x24d   : > { %2428 = vmatmul.mubr.f32.gmra.mxu0 %v1061_v54 }
 0x24e   : > { %v1075_v61 = vmax.f32 %v1072_v63, %v1073_v60  ;;  %2518 = vmatprep.mubr.msk.f32.mxu0 %vm2886_vm2, %v2885_v42  ;;  %2491 = vmatpush3.msra.mxu0 %v1396_v49 }
 0x24f   : > { %2492 = vmatprep.subr.mxu0 %v2885_v42 }
 0x250   : > { %v1076_v3 = vmax.f32 %v1074_v50, %v1075_v61  ;;  %2493 = vmatpush3.msra.mxu0 %v1395_v53 }
 0x251   : > { %2494 = vmatprep.subr.mxu0 %v2885_v42 }
 0x252   : > { %v1077_v9 = vrot.slane %v1076_v3, 4  ;;  %2495 = vmatpush3.msra.mxu0 %v1394_v17 }
 0x253   : > { %2496 = vmatprep.subr.mxu0 %v2885_v42 }
 0x254   : > { %v1078_v2 = vmax.f32 %v1076_v3, %v1077_v9  ;;  %2497 = vmatpush3.msra.mxu0 %v1393_v18 }
 0x255   : > { %2498 = vmatprep.subr.mxu0 %v2885_v42 }
 0x256   : > { %v1079_v12 = vrot.slane %v1078_v2, 2  ;;  %2499 = vmatpush3.msra.mxu0 %v1392_v8 }
 0x257   : > { %2500 = vmatprep.subr.mxu0 %v2885_v42 }
 0x258   : > { %v1080_v59 = vmax.f32 %v1078_v2, %v1079_v12  ;;  %2501 = vmatpush3.msra.mxu0 %v1391_v21 }
 0x259   : > { %2502 = vmatprep.subr.mxu0 %v2885_v42 }
 0x25a   : > { %v1081_v11 = vrot.slane %v1080_v59, 1  ;;  %2503 = vmatpush3.msra.mxu0 %v1390_v1 }
 0x25b   : > { %2504 = vmatprep.subr.mxu0 %v2885_v42 }
 0x25c   : > { %v1082_v39 = vmax.f32 %v1080_v59, %v1081_v11  ;;  %2505 = vmatpush3.msra.mxu0 %v1389_v23 }
 0x25d   : > { %2506 = vmatprep.subr.mxu0 %v2885_v42 }
 0x25e   : > { %2372 = vmatmul.mubr.f32.vlgmr.msra.gmra.mxu1 %v1082_v39  ;;  %2507 = vmatpush3.msra.mxu0 %v1388_v14 }
 0x25f   : > { %2431 = vmatpush3.msra.mxu1 %v1398_v41  ;;  %2508 = vmatprep.subr.mxu0 %v2885_v42 }
 0x260   : > { %2432 = vmatprep.subr.mxu1 %v1397_v15  ;;  %2509 = vmatpush3.msra.mxu0 %v1387_v24 }
 0x261   : > { %2433 = vmatpush3.msra.mxu1 %v1397_v15  ;;  %2510 = vmatprep.subr.mxu0 %v2885_v42 }
 0x262   : > { %2434 = vmatprep.subr.mxu1 %v1396_v49  ;;  %2511 = vmatpush3.msra.mxu0 %v1386_v20 }
 0x263   : > { %2435 = vmatpush3.msra.mxu1 %v1396_v49  ;;  %2512 = vmatprep.subr.mxu0 %v2885_v42 }
 0x264   : > { %2436 = vmatprep.subr.mxu1 %v1395_v53  ;;  %2513 = vmatpush3.msra.mxu0 %v1385_v30 }
 0x265   : > { %2437 = vmatpush3.msra.mxu1 %v1395_v53  ;;  %2514 = vmatprep.subr.mxu0 %v2885_v42 }
 0x266   : > { %2438 = vmatprep.subr.mxu1 %v1394_v17  ;;  %2515 = vmatpush3.msra.mxu0 %v1384_v32 }
 0x267   : > { %2439 = vmatpush3.msra.mxu1 %v1394_v17  ;;  %2516 = vmatprep.subr.mxu0 %v2885_v42  ;;  %v1099_v42 = vld [vmem:[%s3909_s8] sm:$0x1] }
 0x268   : > { %2440 = vmatprep.subr.mxu1 %v1393_v18  ;;  %2517 = vmatpush3.msra.mxu0 %v1383_v35 }
 0x269   : > { %2441 = vmatpush3.msra.mxu1 %v1393_v18 }
 0x26a   : > { %2442 = vmatprep.subr.mxu1 %v1392_v8 }
 0x26b   : > { %2443 = vmatpush3.msra.mxu1 %v1392_v8 }
 0x26c   : > { %2444 = vmatprep.subr.mxu1 %v1391_v21 }
 0x26d   : > { %2445 = vmatpush3.msra.mxu1 %v1391_v21 }
 0x26e   : > { %2446 = vmatprep.subr.mxu1 %v1390_v1 }
 0x26f   : > { %2447 = vmatpush3.msra.mxu1 %v1390_v1 }
 0x270   : > { %2448 = vmatprep.subr.mxu1 %v1389_v23 }
 0x271   : > { %2449 = vmatpush3.msra.mxu1 %v1389_v23 }
 0x272   : > { %2450 = vmatprep.subr.mxu1 %v1388_v14 }
 0x273   : > { %2451 = vmatpush3.msra.mxu1 %v1388_v14 }
 0x274   : > { %2452 = vmatprep.subr.mxu1 %v1387_v24 }
 0x275   : > { %2453 = vmatpush3.msra.mxu1 %v1387_v24 }
 0x276   : > { %2454 = vmatprep.subr.mxu1 %v1386_v20 }
 0x277   : > { %2455 = vmatpush3.msra.mxu1 %v1386_v20 }
 0x278   : > { %2456 = vmatprep.subr.mxu1 %v1385_v30 }
 0x279   : > { %2457 = vmatpush3.msra.mxu1 %v1385_v30 }
 0x27a   : > { %2458 = vmatprep.subr.mxu1 %v1384_v32 }
 0x27b   : > { %2459 = vmatpush3.msra.mxu1 %v1384_v32 }
 0x27c   : > { %2460 = vmatprep.subr.mxu1 %v1383_v35 }
 0x27d   : > { %2461 = vmatpush3.msra.mxu1 %v1383_v35 }
 0x2a4   : > { %v2408_v36 = vpop.f32.mrf.mxu0 }
 0x2a5   : > { %v1274_v55 = vadd.f32 %v2408_v36, %v3499_v52 }
 0x2a6   : > { %v1268_v62 = vpop.f32.mrf.mxu0 }
 0x2a7   : > { %v1269_v60 = vadd.f32 %v3499_v52, %v1268_v62 }
 0x2a8   : > { %v2411_v44 = vpop.f32.mrf.mxu0 }
 0x2a9   : > { %v1284_v9 = vadd.f32 %v2411_v44, %v3499_v52 }
 0x2aa   : > { %v1278_v46 = vpop.f32.mrf.mxu0 }
 0x2ab   : > { %v1279_v63 = vadd.f32 %v3499_v52, %v1278_v46 }
 0x2ae   : > { %v2414_v47 = vpop.f32.mrf.mxu0 }
 0x2af   : > { %v1294_v17 = vadd.f32 %v2414_v47, %v3499_v52 }
 0x2b0   : > { %v1288_v4 = vpop.f32.mrf.mxu0 }
 0x2b1   : > { %v1289_v12 = vadd.f32 %v3499_v52, %v1288_v4 }
 0x2c1   : > { %v2417_v48 = vpop.f32.mrf.mxu0 }
 0x2c2   : > { %v1304_v24 = vadd.f32 %v2417_v48, %v3499_v52 }
 0x2c3   : > { %v1298_v50 = vpop.f32.mrf.mxu0 }
 0x2c4   : > { %v1299_v18 = vadd.f32 %v3499_v52, %v1298_v50 }
 0x2d4   : > { %v2420_v0 = vpop.f32.mrf.mxu0 }
 0x2d5   : > { %v1314_v44 = vadd.f32 %v2420_v0, %v3499_v52 }
 0x2d6   : > { %v1308_v2 = vpop.f32.mrf.mxu0 }
 0x2d7   : > { %v1309_v30 = vadd.f32 %v3499_v52, %v1308_v2 }
 0x2e7   : > { %v2423_v41 = vpop.f32.mrf.mxu0 }
 0x2e8   : > { %v1324_v50 = vadd.f32 %v2423_v41, %v3499_v52 }
 0x31e   : > { %v1166_v51 = vpop.f32.mrf.mxu1 }
 0x31f   : > { %v1167_v54 = vadd.f32 %v1166_v51, %v1099_v42 }
 0x320   : > { %v2373_v56 = vpop.f32.mrf.mxu1 }
 0x321   : > { %v3501_v58 = vadd.f32 %v1177_v57, %v1167_v54 }
 0x323   : > { %v3509_v61 = vrot.slane %v3501_v58, %v580_v29  ;;  %v1812_v3 = vmul.f32 %v3501_v58, %v3501_v58 }
 0x325   : > { %2519 = vmatmul.mubr.f32.vlgmr.msra.gmra.mxu0 %v1812_v3  ;;  %v1351_v59 = vadd.f32 %v3509_v61, %v1269_v60  ;;  %v1352_v11 = vadd.f32 %v3509_v61, %v1274_v55  ;;  %v1353_v39 = vadd.f32 %v3509_v61, %v1279_v63  ;;  %v1354_v27 = vadd.f32 %v3509_v61, %v1284_v9 }
 0x326   : > { %v1355_v53 = vadd.f32 %v3509_v61, %v1289_v12  ;;  %v1357_v14 = vadd.f32 %v3509_v61, %v1299_v18  ;;  %v1358_v35 = vadd.f32 %v3509_v61, %v1304_v24  ;;  %v1359_v62 = vadd.f32 %v3509_v61, %v1309_v30 }
 0x327   : > { %v3520_v29 = vadd.f32 %v1351_v59, %v3057_v5  ;;  %v3523_v15 = vadd.f32 %v1352_v11, %v3060_v6  ;;  %v3526_v49 = vadd.f32 %v1353_v39, %v3064_v7  ;;  %v1318_v5 = vpop.f32.mrf.mxu0  ;;  %v3536_v1 = vadd.f32 %v1354_v27, %v3072_v10 }
 0x328   : > { %v1356_v6 = vadd.f32 %v3509_v61, %v1294_v17  ;;  %v3542_v23 = vadd.f32 %v1355_v53, %v3078_v13  ;;  %v3556_v36 = vadd.f32 %v1357_v14, %v3091_v19  ;;  %v1319_v47 = vadd.f32 %v3499_v52, %v1318_v5 }
 0x329   : > { %v1401_v8 = vmul.f32 %v3520_v29, %v3520_v29  ;;  %v1402_v21 = vmul.f32 %v3523_v15, %v3523_v15  ;;  %v1403_v7 = vmul.f32 %v3526_v49, %v3526_v49  ;;  %v2426_v20 = vpop.f32.mrf.mxu0  ;;  %v1404_v10 = vmul.f32 %v3536_v1, %v3536_v1 }
 0x32a   : > { %v3550_v32 = vadd.f32 %v1356_v6, %v3085_v16  ;;  %v1405_v13 = vmul.f32 %v3542_v23, %v3542_v23  ;;  %v3564_v33 = vadd.f32 %v1358_v35, %v3098_v22  ;;  %v1360_v48 = vadd.f32 %v3509_v61, %v1314_v44 }
 0x32b   : > { %2462 = vmatprep.mubr.f32.mxu1 %v1401_v8  ;;  %v1328_v46 = vpop.f32.mrf.mxu0  ;;  %v1407_v19 = vmul.f32 %v3556_v36, %v3556_v36  ;;  %v3570_v38 = vadd.f32 %v1359_v62, %v3104_v25  ;;  %v1361_v42 = vadd.f32 %v3509_v61, %v1319_v47  ;;  %v1362_v0 = vadd.f32 %v3509_v61, %v1324_v50 }
 0x32c   : > { %2463 = vmatmul.mubr.f32.vlgmr.msra.gmra.mxu1 %v1402_v21  ;;  %v1406_v16 = vmul.f32 %v3550_v32, %v3550_v32  ;;  %v1329_v57 = vadd.f32 %v3499_v52, %v1328_v46  ;;  %v1408_v22 = vmul.f32 %v3564_v33, %v3564_v33  ;;  %v3578_v54 = vadd.f32 %v1360_v48, %v3111_v28 }
 0x32d   : > { %2465 = vmatprep.mubr.f32.mxu1 %v1403_v7  ;;  %v2429_v4 = vpop.f32.mrf.mxu0  ;;  %v1409_v25 = vmul.f32 %v3570_v38, %v3570_v38  ;;  %v3584_v56 = vadd.f32 %v1361_v42, %v3117_v31  ;;  %v1334_v60 = vadd.f32 %v2426_v20, %v3499_v52  ;;  %v3592_v3 = vadd.f32 %v1362_v0, %v3124_v34 }
 0x32e   : > { %v1363_v55 = vadd.f32 %v3509_v61, %v1329_v57  ;;  %v1410_v28 = vmul.f32 %v3578_v54, %v3578_v54  ;;  %v1344_v59 = vadd.f32 %v2429_v4, %v3499_v52  ;;  %v2073_v53 = vmul.f32 -1.442695, %v3520_v29 }
 0x32f   : > { %v1338_v51 = vpop.f32.mrf.mxu0  ;;  %v1364_v9 = vadd.f32 %v3509_v61, %v1334_v60  ;;  %v1411_v31 = vmul.f32 %v3584_v56, %v3584_v56  ;;  %v1412_v11 = vmul.f32 %v3592_v3, %v3592_v3  ;;  %v2074_v17 = vmul.f32 -1.442695, %v3523_v15 }
 0x330   : > { %2466 = vmatmul.mubr.f32.gmra.mxu1 %v1404_v10  ;;  %v1339_v63 = vadd.f32 %v3499_v52, %v1338_v51  ;;  %v3598_v2 = vadd.f32 %v1363_v55, %v3130_v37  ;;  %v1366_v39 = vadd.f32 %v3509_v61, %v1344_v59  ;;  %v2075_v18 = vmul.f32 -1.442695, %v3526_v49 }
 0x331   : > { %2468 = vmatprep.mubr.f32.mxu1 %v1405_v13  ;;  %v3605_v34 = vadd.f32 %v1364_v9, %v3137_v40  ;;  %v2077_v8 = vmul.f32 -1.442695, %v3542_v23  ;;  %v2078_v21 = vmul.f32 -1.442695, %v3550_v32  ;;  %v2079_v5 = vmul.f32 -1.442695, %v3556_v36 }
 0x332   : > { %v1365_v12 = vadd.f32 %v3509_v61, %v1339_v63  ;;  %v1413_v41 = vmul.f32 %v3598_v2, %v3598_v2  ;;  %v3616_v27 = vadd.f32 %v1366_v39, %v3147_v45  ;;  %v2076_v45 = vmul.f32 -1.442695, %v3536_v1 }
 0x333   : > { %v1414_v52 = vmul.f32 %v3605_v34, %v3605_v34  ;;  %v2080_v7 = vmul.f32 -1.442695, %v3564_v33  ;;  %v2081_v14 = vmul.f32 -1.442695, %v3570_v38  ;;  %v2082_v24 = vmul.f32 -1.442695, %v3578_v54 }
 0x334   : > { %2469 = vmatmul.mubr.f32.gmra.mxu1 %v1406_v16  ;;  %v3611_v37 = vadd.f32 %v1365_v12, %v3143_v43  ;;  %v1416_v61 = vmul.f32 %v3616_v27, %v3616_v27  ;;  %v2105_v43 = vmul.f32 -1.442695, %v3501_v58  ;;  %v2083_v30 = vmul.f32 -1.442695, %v3584_v56 }
 0x335   : > { %2471 = vmatprep.mubr.f32.mxu1 %v1407_v19  ;;  %v2084_v13 = vmul.f32 -1.442695, %v3592_v3  ;;  %v2085_v46 = vmul.f32 -1.442695, %v3598_v2  ;;  %v2086_v12 = vmul.f32 -1.442695, %v3605_v34 }
 0x336   : > { %v1415_v40 = vmul.f32 %v3611_v37, %v3611_v37  ;;  %2624 = vpow2.f32 %v2105_v43 }
 0x337   : > { %2626 = vpow2.f32 %v2073_v53  ;;  %v2088_v53 = vmul.f32 -1.442695, %v3616_v27 }
 0x338   : > { %2472 = vmatmul.mubr.f32.gmra.mxu1 %v1408_v22  ;;  %2628 = vpow2.f32 %v2074_v17 }
 0x339   : > { %2474 = vmatprep.mubr.f32.mxu1 %v1409_v25  ;;  %2630 = vpow2.f32 %v2075_v18  ;;  %v3637_v25 = vand.u32 127, %v578_v26 }
 0x33a   : > { %2632 = vpow2.f32 %v2076_v45 }
 0x33b   : > { %2634 = vpow2.f32 %v2077_v8  ;;  %vm1887_vm5 = vcmp.ge.s32.totalorder %v3637_v25, 70  ;;  %vm1888_vm6 = vcmp.lt.s32.totalorder %v3637_v25, 72  ;;  %vm1884_vm7 = vcmp.ge.s32.totalorder %v3637_v25, 64 }
 0x33c   : > { %2475 = vmatmul.mubr.f32.gmra.mxu1 %v1410_v28  ;;  %2636 = vpow2.f32 %v2078_v21  ;;  %vm1885_vm8 = vcmp.lt.s32.totalorder %v3637_v25, 70  ;;  %vm3655_vm9 = vmand %vm1887_vm5, %vm1888_vm6  ;;  %vm1581_vm11 = vcmp.ge.s32.totalorder %v3637_v25, 27  ;;  %vm1582_vm12 = vcmp.lt.s32.totalorder %v3637_v25, 33 }
 0x33d   : > { %2477 = vmatprep.mubr.f32.mxu1 %v1411_v31  ;;  %2638 = vpow2.f32 %v2079_v5  ;;  %vm3665_vm10 = vmand %vm1884_vm7, %vm1885_vm8  ;;  %vm1578_vm13 = vcmp.ge.s32.totalorder %v3637_v25, 3  ;;  %vm1579_vm14 = vcmp.lt.s32.totalorder %v3637_v25, 21 }
 0x33e   : > { %2640 = vpow2.f32 %v2080_v7 }
 0x33f   : > { %2642 = vpow2.f32 %v2081_v14 }
 0x340   : > { %2478 = vmatmul.mubr.f32.gmra.mxu1 %v1412_v11  ;;  %2644 = vpow2.f32 %v2082_v24 }
 0x341   : > { %2480 = vmatprep.mubr.f32.mxu1 %v1413_v41  ;;  %v2087_v41 = vmul.f32 -1.442695, %v3611_v37 }
 0x343   : > { %v2625_v6 = vpop.eup %2624 }
 0x344   : > { %2481 = vmatmul.mubr.f32.gmra.mxu1 %v1414_v52  ;;  %v1894_v20 = vadd.f32 1.0, %v2625_v6  ;;  %v2627_v10 = vpop.eup %2626 }
 0x345   : > { %2483 = vmatprep.mubr.f32.mxu1 %v1415_v40  ;;  %v2629_v35 = vpop.eup %2628  ;;  %v1648_v16 = vadd.f32 1.0, %v2627_v10 }
 0x346   : > { %v2631_v44 = vpop.eup %2630  ;;  %2646 = vrcp.f32 %v1894_v20  ;;  %v1649_v19 = vadd.f32 1.0, %v2629_v35 }
 0x347   : > { %v2633_v4 = vpop.eup %2632  ;;  %2648 = vpow2.f32 %v2083_v30  ;;  %v1650_v50 = vadd.f32 1.0, %v2631_v44 }
 0x348   : > { %2484 = vmatmul.mubr.f32.gmra.mxu1 %v1416_v61  ;;  %v2635_v42 = vpop.eup %2634  ;;  %v1651_v57 = vadd.f32 1.0, %v2633_v4 }
 0x349   : > { %v2637_v51 = vpop.eup %2636  ;;  %v1652_v22 = vadd.f32 1.0, %v2635_v42 }
 0x34a   : > { %v1653_v60 = vadd.f32 1.0, %v2637_v51  ;;  %v2639_v28 = vpop.eup %2638 }
 0x34b   : > { %v2641_v31 = vpop.eup %2640  ;;  %v1654_v6 = vadd.f32 1.0, %v2639_v28 }
 0x34c   : > { %v2643_v11 = vpop.eup %2642  ;;  %v1655_v35 = vadd.f32 1.0, %v2641_v31 }
 0x34d   : > { %v3645_v26 = vpop.eup %2644 }
 0x353   : > { %v2647_v40 = vpop.eup %2646 }
 0x354   : > { %v3650_v43 = vpop.eup %2648  ;;  %v1897_v30 = vsel %vm3655_vm9, %v2647_v40, %v3501_v58 }
 0x3e5   : > { %v1879_v62 = vpop.f32.mrf.mxu0 }
 0x3e6   : > { %v1880_v47 = vadd.f32 1e-08, %v1879_v62 }
 0x3e7   : > { %v2520_v48 = vpop.f32.mrf.mxu0 }
 0x3e8   : > { %2650 = vrsqrt.f32 %v1880_v47  ;;  %v1656_v47 = vadd.f32 1.0, %v2643_v11 }
 0x3e9   : > { %2652 = vpow2.f32 %v2084_v13 }
 0x3ea   : > { %2654 = vpow2.f32 %v2085_v46 }
 0x3eb   : > { %2656 = vrcp.f32 %v1648_v16 }
 0x3ec   : > { %2658 = vrcp.f32 %v1649_v19  ;;  %v2464_v0 = vpop.f32.mrf.mxu1 }
 0x3ed   : > { %2660 = vrcp.f32 %v1650_v50  ;;  %v1489_v55 = vadd.f32 1e-08, %v2464_v0 }
 0x3ee   : > { %2662 = vrcp.f32 %v1651_v57  ;;  %v1483_v63 = vpop.f32.mrf.mxu1 }
 0x3ef   : > { %2664 = vrsqrt.f32 %v1489_v55  ;;  %v1484_v9 = vadd.f32 1e-08, %v1483_v63 }
 0x3f0   : > { %2666 = vrcp.f32 %v1652_v22  ;;  %v2467_v59 = vpop.f32.mrf.mxu1 }
 0x3f1   : > { %2668 = vrsqrt.f32 %v1484_v9  ;;  %v1499_v39 = vadd.f32 1e-08, %v2467_v59 }
 0x3f2   : > { %2670 = vrcp.f32 %v1653_v60  ;;  %v1493_v52 = vpop.f32.mrf.mxu1 }
 0x3f3   : > { %2672 = vrsqrt.f32 %v1499_v39  ;;  %v1494_v61 = vadd.f32 1e-08, %v1493_v52 }
 0x3f4   : > { %2674 = vpow2.f32 %v2086_v12  ;;  %v2470_v17 = vpop.f32.mrf.mxu1 }
 0x3f5   : > { %v2651_v45 = vpop.eup %2650  ;;  %2676 = vrsqrt.f32 %v1494_v61  ;;  %v1509_v8 = vadd.f32 1e-08, %v2470_v17 }
 0x3f6   : > { %v3669_v5 = vpop.eup %2652  ;;  %2678 = vpow2.f32 %v2087_v41  ;;  %v1503_v7 = vpop.f32.mrf.mxu1  ;;  %v1890_v14 = vmul.f32 %v2651_v45, %v3501_v58 }
 0x3f7   : > { %v3672_v24 = vpop.eup %2654  ;;  %2680 = vrsqrt.f32 %v1509_v8  ;;  %v1504_v20 = vadd.f32 1e-08, %v1503_v7 }
 0x3f8   : > { %v3684_v10 = vpop.eup %2656  ;;  %2682 = vpow2.f32 %v2088_v53  ;;  %v2473_v13 = vpop.f32.mrf.mxu1  ;;  %v1898_v62 = vsel %vm3665_vm10, %v1890_v14, %v1897_v30 }
 0x3f9   : > { %v3688_v58 = vpop.eup %2658  ;;  %2684 = vrsqrt.f32 %v1504_v20  ;;  %v1519_v44 = vadd.f32 1e-08, %v2473_v13  ;;  %1899 = vst [vmem:[%s419_s22] sm:$0x1] %v1898_v62 }
 0x3fa   : > { %v3692_v46 = vpop.eup %2660  ;;  %2686 = vrcp.f32 %v1654_v6  ;;  %v1513_v4 = vpop.f32.mrf.mxu1 }
 0x3fb   : > { %2791 = shalt.err (!%p2788_p3)
}
 0x3fc   : > { %s2792_s22 = scalar_lea.hbm %s3680_s14, 16  ;;  %s2796_s29 = scalar_lea.hbm %s3912_s11, 32 }
 0x3fd   : > { %p2793_p2 = scmp.ne.s32.totalorder %s3680_s14, %s2792_s22  ;;  %p2797_p7 = scmp.lt.s32.totalorder %s3680_s14, %s3912_s11 }
 0x3fe   : > { %p2798_p6 = scmp.lt.s32.totalorder %s2796_s29, %s2792_s22 }
 0x3ff   : > { %p2794_p4 = pnand %p2793_p2, %p2990_p5 }
 0x400   : > { %p2799_p9 = por %p2798_p6, %p2797_p7 }
 0x401   : > { %p2795_p13 = pneg %p2794_p4 }
 0x403   : > { %p2800_p10 = pnand %p2799_p9, %p2795_p13 }
 0x405   : > { %2803 = shalt.err (!%p2800_p10)
}
 0x406   : > { %2530 = dma.vmem_to_hbm [thread:$0]  (%p2990_p5), %s3682_s24, 16, %s3680_s14, %s1906_s16   ;;  %v2663_v16 = vpop.eup %2662  ;;  %2688 = vrsqrt.f32 %v1519_v44  ;;  %v1514_v48 = vadd.f32 1e-08, %v1513_v4  ;;  %vm3721_vm15 = vmand %vm1581_vm11, %vm1582_vm12  ;;  %v1657_v50 = vadd.f32 1.0, %v3645_v26  ;;  %v2476_v57 = vpop.f32.mrf.mxu1  ;;  %v1658_v63 = vadd.f32 1.0, %v3650_v43 }
 0x407   : > { %v2665_v19 = vpop.eup %2664  ;;  %2690 = vrcp.f32 %v1655_v35  ;;  %vm3732_vm0 = vmand %vm1578_vm13, %vm1579_vm14  ;;  %v1529_v55 = vadd.f32 1e-08, %v2476_v57  ;;  %s2051_s0 = sshll.u32 %s3641_s13, 6  ;;  %v1699_v25 = vsel %vm3721_vm15, %v3688_v58, %v3523_v15  ;;  %v1698_v11 = vsel %vm3721_vm15, %v3684_v10, %v3520_v29  ;;  %s2129_s24 = sshll.u32 %s2973_s21, 10 }
 0x408   : > { %v3726_v51 = vpop.eup %2666  ;;  %v1585_v0 = vmul.f32 %v2665_v19, %v3523_v15  ;;  %2692 = vrsqrt.f32 %v1514_v48  ;;  %v1523_v28 = vpop.f32.mrf.mxu1  ;;  %v1659_v39 = vadd.f32 1.0, %v3669_v5  ;;  %v1701_v45 = vsel %vm3721_vm15, %v2663_v16, %v3536_v1  ;;  %s3765_s1 = scalar_lea.vmem [#allocation7], %s2051_s0  ;;  %s3856_s26 = scalar_lea.hbm %s3911_s10, %s2129_s24 }
 0x409   : > { %v2669_v60 = vpop.eup %2668  ;;  %2694 = vrcp.f32 %v1656_v47  ;;  %v1524_v12 = vadd.f32 1e-08, %v1523_v28  ;;  %v1700_v6 = vsel %vm3721_vm15, %v3692_v46, %v3526_v49  ;;  %v1702_v16 = vsel %vm3721_vm15, %v3726_v51, %v3542_v23  ;;  %s1918_s14 = sshll.u32 %s3765_s1, 4  ;;  %s1901_s12 = scalar_lea.sflag [#allocation4], %s3641_s13  ;;  %s3858_s14 = int_to_ptr.vmem [resolvable:$true] %s1918_s14 }
 0x40a   : > { %v2671_v9 = vpop.eup %2670  ;;  %v1584_v31 = vmul.f32 %v2669_v60, %v3520_v29  ;;  %2696 = vrsqrt.f32 %v1529_v55  ;;  %v1717_v26 = vsel %vm3732_vm0, %v1585_v0, %v1699_v25  ;;  %v2479_v41 = vpop.f32.mrf.mxu1  ;;  %v1660_v29 = vadd.f32 1.0, %v3672_v24  ;;  %s2804_s15 = scalar_lea.vmem %s3858_s14, 1024  ;;  %s2889_s22 = smov [#allocation7]  }
 0x40b   : > { %v2673_v59 = vpop.eup %2672  ;;  %2698 = vrcp.f32 %v1657_v50  ;;  %v1539_v61 = vadd.f32 1e-08, %v2479_v41  ;;  %v1703_v44 = vsel %vm3721_vm15, %v2671_v9, %v3550_v32  ;;  %p2805_p12 = scmp.ne.s32.totalorder %s3858_s14, %s2804_s15  ;;  %s2808_s25 = sshll.u32 %s2889_s22, 4  ;;  %s2809_s25 = int_to_ptr.vmem [resolvable:$false] %s2808_s25 }
 0x40c   : > { %v2675_v52 = vpop.eup %2674  ;;  %v1716_v15 = vsel %vm3732_vm0, %v1584_v31, %v1698_v11  ;;  %v1587_v40 = vmul.f32 %v2673_v59, %v3536_v1  ;;  %2700 = vrsqrt.f32 %v1524_v12  ;;  %v1533_v17 = vpop.f32.mrf.mxu1  ;;  %s2810_s30 = scalar_lea.vmem %s2809_s25, 2048  ;;  %p2811_p0 = scmp.lt.s32.totalorder %s3858_s14, %s2809_s25 }
 0x40d   : > { %v2677_v43 = vpop.eup %2676  ;;  %2702 = vrcp.f32 %v1658_v63  ;;  %v2133_v53 = vpack.c.bf16 %v1717_v26, %v1716_v15  ;;  %v1534_v21 = vadd.f32 1e-08, %v1533_v17  ;;  %v1661_v7 = vadd.f32 1.0, %v2675_v52  ;;  %p2806_p8 = pnand %p2805_p12, %p2990_p5  ;;  %p2812_p1 = scmp.lt.s32.totalorder %s2810_s30, %s2804_s15 }
 0x40e   : > { %v2679_v18 = vpop.eup %2678  ;;  %v1586_v8 = vmul.f32 %v2677_v43, %v3526_v49  ;;  %2704 = vrsqrt.f32 %v1539_v61  ;;  %v1719_v1 = vsel %vm3732_vm0, %v1587_v40, %v1701_v45  ;;  %v2482_v14 = vpop.f32.mrf.mxu1 }
 0x40f   : > { %v2681_v5 = vpop.eup %2680  ;;  %2706 = vrcp.f32 %v1659_v39  ;;  %2134 = vst [vmem:[%s3765_s1] sm:$0xff] %v2133_v53   ;;  %v1549_v49 = vadd.f32 1e-08, %v2482_v14  ;;  %v1662_v35 = vadd.f32 1.0, %v2679_v18  ;;  %p2807_p11 = pneg %p2806_p8  ;;  %p2813_p3 = por %p2812_p1, %p2811_p0 }
 0x410   : > { %v2683_v24 = vpop.eup %2682  ;;  %v1718_v20 = vsel %vm3732_vm0, %v1586_v8, %v1700_v6  ;;  %v1589_v30 = vmul.f32 %v2681_v5, %v3550_v32  ;;  %2708 = vrsqrt.f32 %v1534_v21  ;;  %v1543_v62 = vpop.f32.mrf.mxu1 }
 0x411   : > { %v2685_v10 = vpop.eup %2684  ;;  %2710 = vrcp.f32 %v1660_v29  ;;  %v2138_v13 = vpack.c.bf16 %v1719_v1, %v1718_v20  ;;  %v1544_v47 = vadd.f32 1e-08, %v1543_v62  ;;  %v1663_v48 = vadd.f32 1.0, %v2683_v24  ;;  %p2814_p2 = pnand %p2813_p3, %p2807_p11 }
 0x412   : > { %v2687_v58 = vpop.eup %2686  ;;  %v1588_v46 = vmul.f32 %v2685_v10, %v3542_v23  ;;  %2712 = vrsqrt.f32 %v1549_v49  ;;  %v1721_v19 = vsel %vm3732_vm0, %v1589_v30, %v1703_v44  ;;  %v2485_v50 = vpop.f32.mrf.mxu1 }
 0x413   : > { %v2689_v4 = vpop.eup %2688  ;;  %2714 = vrcp.f32 %v1661_v7  ;;  %2170 = vst [vmem:[%s3765_s1 + $0x8] sm:$0xff] %v2138_v13   ;;  %v1559_v55 = vadd.f32 1e-08, %v2485_v50  ;;  %v1704_v31 = vsel %vm3721_vm15, %v2687_v58, %v3556_v36 }
 0x414   : > { %v2691_v57 = vpop.eup %2690  ;;  %v1720_v32 = vsel %vm3732_vm0, %v1588_v46, %v1702_v16  ;;  %v1591_v0 = vmul.f32 %v2689_v4, %v3564_v33  ;;  %2716 = vrsqrt.f32 %v1544_v47  ;;  %v1553_v23 = vpop.f32.mrf.mxu1 }
 0x415   : > { %v2693_v60 = vpop.eup %2692  ;;  %2718 = vrcp.f32 %v1662_v35  ;;  %v2143_v63 = vpack.c.bf16 %v1721_v19, %v1720_v32  ;;  %v1554_v9 = vadd.f32 1e-08, %v1553_v23  ;;  %v1705_v12 = vsel %vm3721_vm15, %v2691_v57, %v3564_v33 }
 0x416   : > { %v2695_v51 = vpop.eup %2694  ;;  %v1590_v28 = vmul.f32 %v2693_v60, %v3556_v36  ;;  %2720 = vrsqrt.f32 %v1559_v55  ;;  %v1723_v11 = vsel %vm3732_vm0, %v1591_v0, %v1705_v12 }
 0x417   : > { %v2697_v25 = vpop.eup %2696  ;;  %2722 = vrcp.f32 %v1663_v48  ;;  %2171 = vst [vmem:[%s3765_s1 + $0x10] sm:$0xff] %v2143_v63   ;;  %v1706_v33 = vsel %vm3721_vm15, %v2695_v51, %v3570_v38 }
 0x418   : > { %v2699_v59 = vpop.eup %2698  ;;  %v1722_v39 = vsel %vm3732_vm0, %v1590_v28, %v1704_v31  ;;  %v1593_v26 = vmul.f32 %v2697_v25, %v3578_v54  ;;  %2724 = vrsqrt.f32 %v1554_v9 }
 0x419   : > { %v2701_v41 = vpop.eup %2700  ;;  %v2148_v52 = vpack.c.bf16 %v1723_v11, %v1722_v39  ;;  %v1707_v61 = vsel %vm3721_vm15, %v2699_v59, %v3578_v54 }
 0x41a   : > { %v2703_v36 = vpop.eup %2702  ;;  %v1592_v15 = vmul.f32 %v2701_v41, %v3570_v38  ;;  %v1725_v29 = vsel %vm3732_vm0, %v1593_v26, %v1707_v61 }
 0x41b   : > { %v2705_v40 = vpop.eup %2704  ;;  %2172 = vst [vmem:[%s3765_s1 + $0x18] sm:$0xff] %v2148_v52   ;;  %v1708_v54 = vsel %vm3721_vm15, %v2703_v36, %v3584_v56 }
 0x41c   : > { %v2707_v43 = vpop.eup %2706  ;;  %v1724_v53 = vsel %vm3732_vm0, %v1592_v15, %v1706_v33  ;;  %v1595_v17 = vmul.f32 %v2705_v40, %v3592_v3 }
 0x41d   : > { %v2709_v18 = vpop.eup %2708  ;;  %v2153_v45 = vpack.c.bf16 %v1725_v29, %v1724_v53  ;;  %v1709_v5 = vsel %vm3721_vm15, %v2707_v43, %v3592_v3 }
 0x41e   : > { %v2711_v8 = vpop.eup %2710  ;;  %v1594_v21 = vmul.f32 %v2709_v18, %v3584_v56  ;;  %v1727_v7 = vsel %vm3732_vm0, %v1595_v17, %v1709_v5 }
 0x41f   : > { %v2713_v38 = vpop.eup %2712  ;;  %2173 = vst [vmem:[%s3765_s1 + $0x20] sm:$0xff] %v2153_v45   ;;  %v1710_v3 = vsel %vm3721_vm15, %v2711_v8, %v3598_v2 }
 0x420   : > { %v2715_v6 = vpop.eup %2714  ;;  %v1726_v1 = vsel %vm3732_vm0, %v1594_v21, %v1708_v54  ;;  %v1597_v14 = vmul.f32 %v2713_v38, %v3605_v34 }
 0x421   : > { %v2717_v24 = vpop.eup %2716  ;;  %v2158_v20 = vpack.c.bf16 %v1727_v7, %v1726_v1  ;;  %v1711_v10 = vsel %vm3721_vm15, %v2715_v6, %v3605_v34 }
 0x422   : > { %v2719_v30 = vpop.eup %2718  ;;  %v1596_v56 = vmul.f32 %v2717_v24, %v3598_v2  ;;  %v1729_v13 = vsel %vm3732_vm0, %v1597_v14, %v1711_v10 }
 0x423   : > { %v2721_v49 = vpop.eup %2720  ;;  %2174 = vst [vmem:[%s3765_s1 + $0x28] sm:$0xff] %v2158_v20   ;;  %v1712_v34 = vsel %vm3721_vm15, %v2719_v30, %v3611_v37 }
 0x424   : > { %v2723_v35 = vpop.eup %2722  ;;  %v1728_v62 = vsel %vm3732_vm0, %v1596_v56, %v1710_v3  ;;  %v1599_v58 = vmul.f32 %v2721_v49, %v3616_v27 }
 0x425   : > { %v2725_v44 = vpop.eup %2724  ;;  %v2163_v46 = vpack.c.bf16 %v1729_v13, %v1728_v62  ;;  %v1713_v47 = vsel %vm3721_vm15, %v2723_v35, %v3616_v27 }
 0x426   : > { %v1598_v2 = vmul.f32 %v2725_v44, %v3611_v37  ;;  %v1731_v4 = vsel %vm3732_vm0, %v1599_v58, %v1713_v47 }
 0x427   : > { %2175 = vst [vmem:[%s3765_s1 + $0x30] sm:$0xff] %v2163_v46  }
 0x428   : > { %v1730_v16 = vsel %vm3732_vm0, %v1598_v2, %v1712_v34 }
 0x429   : > { %v2168_v37 = vpack.c.bf16 %v1731_v4, %v1730_v16 }
 0x42b   : > { %2176 = vst [vmem:[%s3765_s1 + $0x38] sm:$0xff] %v2168_v37  }
 0x42c   : > { %2817 = shalt.err (!%p2814_p2)
}
 0x42d   : > { %s2818_s29 = scalar_lea.hbm %s3856_s26, 1024  ;;  %s2822_s24 = scalar_lea.hbm %s3911_s10, 2048 }
 0x42e   : > { %p2819_p4 = scmp.ne.s32.totalorder %s3856_s26, %s2818_s29  ;;  %p2823_p6 = scmp.lt.s32.totalorder %s3856_s26, %s3911_s10 }
 0x42f   : > { %p2824_p9 = scmp.lt.s32.totalorder %s2822_s24, %s2818_s29 }
 0x430   : > { %p2820_p13 = pnand %p2819_p4, %p2990_p5 }
 0x431   : > { %p2825_p10 = por %p2824_p9, %p2823_p6 }
 0x432   : > { %p2821_p7 = pneg %p2820_p13 }
 0x434   : > { %p2826_p12 = pnand %p2825_p10, %p2821_p7 }
 0x436   : > { %2829 = shalt.err (!%p2826_p12)
}
 0x437   : > { %s2890_s15 = smov 64   ;;  %s2891_s22 = smov 4  }
 0x438   : > { %2529 = dma.vmem_to_hbm [thread:$0]  (%p2990_p5), %s3858_s14, 1024, %s3856_s26, %s1901_s12, %s2890_s15, %s2890_s15, %s2891_s22  }
 0x439 PF: > { %p2551_p8 = scmp.ge.s32.totalorder %s2876_s20, 2  ;;  %s1946_s25 = sand.u32 1, %s2864_s17  }
 0x43a   : > { %p3935_p11 = scmp.ne.s32.totalorder %s3918_s28, 0  ;;  %s1947_s30 = scalar_lea.sflag [#allocation4], %s1946_s25 }
 0x43c   : > { %p2541_p0 = pnand %p2551_p8, %p3935_p11 }
 0x43e   : > { %p2542_p1 = pneg %p2541_p0 }
 0x440   : > { %2855 = dma.done.wait (%p2542_p1), %s1947_s30, 1024  }
 0x441   : > { %2857 = vsyncadd (%p2542_p1), %s1947_s30, 4294966272  ;;  %s1956_s29 = scalar_lea.sflag [#allocation9], %s1946_s25 }
 0x442   : > { %2859 = dma.done.wait (%p2542_p1), %s1956_s29, 16  }
 0x443   : > { %2861 = vsyncadd (%p2542_p1), %s1956_s29, 4294967280  ;;  %s3936_s27 = sld [smem:[#allocation14_spill]]  ;;  %p27_p5 = scmp.ge.s32.totalorder %s2977_s23, 4  }
 0x444   : > { %s3937_s17 = smov %s2868_s18  ;;  %s3938_s18 = smov %s2872_s19 }
 0x445   : > { %s3940_s20 = smov %s2977_s23  ;;  %29 = sbr.rel (!%p27_p5) target bundleno = 10 (0xa), region = 121 }
 0x449   : > { %s3939_s19 = smov %s3936_s27 }
 0x44a   :  { %1960 = vsyncpa [#allocation3], 1 }
 0x44b   :  { %1962 = vsyncpa [#allocation3 + $0x1], 1 }
 0x44c   :  { %1963 = vsyncpa [#allocation6], 1 }
 0x44d   :  { %1964 = vsyncpa [#allocation4], 1 }
 0x44e   :  { %1966 = vsyncpa [#allocation4 + $0x1], 1 }
 0x44f   :  { %1967 = vsyncpa [#allocation9], 1 }
 0x450   :  { %1969 = vsyncpa [#allocation9 + $0x1], 1 }

</bundles_post_ra>
